<compile_context>
chip_gen: v5e
topology: v5e:2x2
jax: 0.10.0
libtpu: 0.0.40
codegen_flags: <defaults>
</compile_context>

<pallas_src>
import jax
import jax.numpy as jnp
from jax import lax
from jax.experimental import pallas as pl
from jax.experimental.pallas import tpu as pltpu

EPS = 1e-5                     # PyTorch BatchNorm2d default eps
COMPUTE_DTYPE = jnp.bfloat16   # MXU operand dtype (accumulate + BN math in f32)


# ------------------------------ Pallas kernel ------------------------------ #

def _make_kernel(N, C, H, W):
    """Builds the fused residual-block kernel for static shapes."""
    Hp, Wp = H + 2, W + 2
    Lp = Hp * Wp               # flattened padded image (pixels on lanes)
    halo = Wp + 1              # flat zero halo so every 3x3 tap is a pure slice
    Le = Lp + 2 * halo
    inv_m = 1.0 / float(N * H * W)   # 1 / (#valid pixels in the whole batch)

    def kernel(x_ref, w1_ref, w2_ref, g1_ref, bt1_ref, g2_ref, bt2_ref,
               mask_ref, o_ref, xcol, y1e):
        # x_ref  : (N, C, Le)  f32  zero-padded + haloed images, pixels on lanes
        # w*_ref : (C, 9C)     bf16 weights, column index = (3*dh+dw)*C + c_in
        # g*/bt* : (1, C, 1)   f32  BatchNorm gamma / beta
        # mask   : (1, 1, Lp)  f32  1.0 at valid pixels of the padded layout
        # o_ref  : (N, C, Lp)  f32  output (padded layout; wrapper strips pads)
        # xcol   : (9C, Lp)    f32  im2col scratch (one image / one conv)
        # y1e    : (N, C, Le)  f32  conv2 input scratch (zero halo)
        mask2 = mask_ref[0]            # (1, Lp)
        mask3 = mask_ref[...]          # (1, 1, Lp)

        def conv(src_ref, n, w_ref):
            """3x3 'same' conv for image n: 9 contiguous lane slices build the
            im2col tile, then ONE (C,9C)@(9C,Lp) bf16 matmul (f32 accumulate)."""
            for dh in range(3):
                for dw in range(3):
                    k = 3 * dh + dw
                    off = dh * Wp + dw                       # static lane offset
                    xcol[k * C:(k + 1) * C, :] = src_ref[n, :, off:off + Lp]
            return jnp.dot(w_ref[...],
                           xcol[...].astype(COMPUTE_DTYPE),
                           preferred_element_type=jnp.float32)   # (C, Lp) f32

        def batch_stats(z_ref):
            """Masked two-pass batch mean / (biased) variance over valid pixels."""
            z = z_ref[...]                                            # (N, C, Lp)
            mean = jnp.sum(jnp.sum(z * mask3, axis=2, keepdims=True),
                           axis=0, keepdims=True) * inv_m             # (1, C, 1)
            d = (z - mean) * mask3
            var = jnp.sum(jnp.sum(d * d, axis=2, keepdims=True),
                          axis=0, keepdims=True) * inv_m              # (1, C, 1)
            return mean, var

        # Zero the conv2-input scratch once: the halo / pad regions must stay
        # zero and the interior is fully overwritten before it is read.
        y1e[...] = jnp.zeros_like(y1e)

        # -------- conv1 (one matmul per image); raw z1 parked in o_ref -------
        for n in range(N):
            o_ref[n] = conv(x_ref, n, w1_ref)

        # -------- BN1 (train-mode batch stats) + ReLU -> conv2 input ---------
        mean1, var1 = batch_stats(o_ref)
        scale1 = g1_ref[0] * lax.rsqrt(var1[0] + EPS)      # (C, 1)
        shift1 = bt1_ref[0] - mean1[0] * scale1            # (C, 1)
        for n in range(N):
            y1 = jnp.maximum(o_ref[n] * scale1 + shift1, 0.0) * mask2
            y1e[n, :, halo:halo + Lp] = y1                 # halo rows stay 0

        # -------- conv2; raw z2 parked in o_ref (overwrites z1) --------------
        for n in range(N):
            o_ref[n] = conv(y1e, n, w2_ref)

        # -------- BN2 + residual add ------------------------------------------
        mean2, var2 = batch_stats(o_ref)
        scale2 = g2_ref[0] * lax.rsqrt(var2[0] + EPS)
        shift2 = bt2_ref[0] - mean2[0] * scale2
        for n in range(N):
            res = x_ref[n, :, halo:halo + Lp]              # original x (pads = 0)
            o_ref[n] = o_ref[n] * scale2 + shift2 + res

    return kernel, Lp, Le, halo


# ------------------------------- wrapper ----------------------------------- #

@jax.jit
def residual_block(x_nchw, params):
    """Forward pass of ResidualBlock; NCHW in, NCHW out."""
    N, C, H, W = x_nchw.shape
    Hp, Wp = H + 2, W + 2
    kernel, Lp, Le, halo = _make_kernel(N, C, H, W)

    x = x_nchw.astype(jnp.float32)
    # SAME-conv zero pad -> flatten pixels onto the lane axis -> add a
    # (Wp+1)-pixel zero halo so every 3x3 tap is a contiguous lane slice.
    x_ext = jnp.pad(
        jnp.pad(x, ((0, 0), (0, 0), (1, 1), (1, 1))).reshape(N, C, Lp),
        ((0, 0), (0, 0), (halo, halo)))                    # (N, C, Le)

    def wmat(w):  # (C_out, C_in, 3, 3) -> (C_out, 9*C_in), tap-major columns
        return jnp.transpose(w, (0, 2, 3, 1)).reshape(C, 9 * C).astype(COMPUTE_DTYPE)

    w1m, w2m = wmat(params["w1"]), wmat(params["w2"])
    g1 = params["g1"].reshape(1, C, 1).astype(jnp.float32)
    bt1 = params["bt1"].reshape(1, C, 1).astype(jnp.float32)
    g2 = params["g2"].reshape(1, C, 1).astype(jnp.float32)
    bt2 = params["bt2"].reshape(1, C, 1).astype(jnp.float32)
    # Conv biases are intentionally NOT passed: train-mode BatchNorm subtracts
    # the per-channel batch mean, which cancels a constant bias exactly.

    # 1.0 at valid pixels of the padded flat layout, 0.0 at pad positions.
    mask = jnp.pad(jnp.ones((H, W), jnp.float32), ((1, 1), (1, 1))).reshape(1, 1, Lp)

    # VMEM budget sized from the resident working set (+ headroom for the
    # compiler's temporaries), clamped to what every generation can grant.
    est = (N * C * Le * 4            # x_ext
           + N * C * Lp * 4          # output block
           + N * C * Le * 4          # y1e scratch
           + 9 * C * Lp * 4          # xcol scratch
           + 2 * 9 * C * C * 2)      # both weight matrices (bf16)
    vmem_limit = int(min(64 * 2**20, max(32 * 2**20, 4 * est)))

    vmem_spec = pl.BlockSpec(memory_space=pltpu.MemorySpace.VMEM)
    out = pl.pallas_call(
        kernel,
        out_shape=jax.ShapeDtypeStruct((N, C, Lp), jnp.float32),
        in_specs=[vmem_spec] * 8,
        out_specs=vmem_spec,
        scratch_shapes=[
            pltpu.VMEM((9 * C, Lp), jnp.float32),   # im2col tile
            pltpu.VMEM((N, C, Le), jnp.float32),    # conv2 input (haloed)
        ],
        compiler_params=pltpu.CompilerParams(vmem_limit_bytes=vmem_limit),
    )(x_ext, w1m, w2m, g1, bt1, g2, bt2, mask)

    # Strip the pad rows/cols; layout is already channel-major (no transpose).
    return out.reshape(N, C, Hp, Wp)[:, :, 1:H + 1, 1:W + 1]


# ------------------------------- reference --------------------------------- #

def reference(x, p):
    def conv(x_, w, b):
        y = lax.conv_general_dilated(
            x_, w, (1, 1), "SAME",
            dimension_numbers=("NCHW", "OIHW", "NCHW"),
            precision=lax.Precision.HIGHEST)
        return y + b[None, :, None, None]

    def bn(y, g, bt):
        mean = y.mean(axis=(0, 2, 3), keepdims=True)
        var = ((y - mean) ** 2).mean(axis=(0, 2, 3), keepdims=True)
        return (y - mean) / jnp.sqrt(var + EPS) * g[None, :, None, None] \
            + bt[None, :, None, None]

    y1 = jnp.maximum(bn(conv(x, p["w1"], p["b1"]), p["g1"], p["bt1"]), 0.0)
    return bn(conv(y1, p["w2"], p["b2"]), p["g2"], p["bt2"]) + x


# --------------------------------- main ------------------------------------ #

if __name__ == "__main__":
    key = jax.random.PRNGKey(0)
    ks = jax.random.split(key, 10)

    N, C, H, W = 2, 4, 16, 16          # layer_size = 4
    bound = 1.0 / (C * 9) ** 0.5       # PyTorch-style conv init range

    x = jax.random.normal(ks[0], (N, C, H, W), jnp.float32)
    params = {
        "w1": jax.random.uniform(ks[1], (C, C, 3, 3), jnp.float32, -bound, bound),
        "b1": jax.random.uniform(ks[2], (C,), jnp.float32, -bound, bound),
        "g1": jax.random.uniform(ks[3], (C,), jnp.float32, 0.5, 1.5),
        "bt1": jax.random.uniform(ks[4], (C,), jnp.float32, -0.1, 0.1),
        "w2": jax.random.uniform(ks[5], (C, C, 3, 3), jnp.float32, -bound, bound),
        "b2": jax.random.uniform(ks[6], (C,), jnp.float32, -bound, bound),
        "g2": jax.random.uniform(ks[7], (C,), jnp.float32, 0.5, 1.5),
        "bt2": jax.random.uniform(ks[8], (C,), jnp.float32, -0.1, 0.1),
    }

    out = jax.block_until_ready(residual_block(x, params))

    ref = reference(x, params)
    assert out.shape == x.shape, (out.shape, x.shape)
    # Tolerance accounts for bf16 MXU operands (f32 accumulation / BN math).
    if not bool(jnp.allclose(out, ref, atol=2e-2, rtol=2e-2)):
        max_err = float(jnp.max(jnp.abs(out - ref)))
        raise SystemExit(f"mismatch vs reference, max abs err = {max_err}")

    print("KERNEL_OK")
</pallas_src>

<mosaic_0001>
module attributes {stable_mosaic.version = 11 : i64} {
  func.func @kernel(%arg0: memref<2x4x362xf32, #tpu.memory_space<vmem>>, %arg1: memref<4x36xbf16, #tpu.memory_space<vmem>>, %arg2: memref<4x36xbf16, #tpu.memory_space<vmem>>, %arg3: memref<1x4x1xf32, #tpu.memory_space<vmem>>, %arg4: memref<1x4x1xf32, #tpu.memory_space<vmem>>, %arg5: memref<1x4x1xf32, #tpu.memory_space<vmem>>, %arg6: memref<1x4x1xf32, #tpu.memory_space<vmem>>, %arg7: memref<1x1x324xf32, #tpu.memory_space<vmem>>, %arg8: memref<2x4x324xf32, #tpu.memory_space<vmem>>, %arg9: memref<36x324xf32, #tpu.memory_space<vmem>>, %arg10: memref<2x4x362xf32, #tpu.memory_space<vmem>>) attributes {dimension_semantics = [], scalar_prefetch = 0 : i64, scratch_operands = 2 : i64, tpu.core_type = #tpu.core_type<tc>} {
    %c0 = arith.constant 0 : index
    %c0_0 = arith.constant 0 : index
    %c0_1 = arith.constant 0 : index
    %0 = vector.load %arg7[%c0, %c0_0, %c0_1] : memref<1x1x324xf32, #tpu.memory_space<vmem>>, vector<1x1x324xf32>
    %1 = vector.shape_cast %0 : vector<1x1x324xf32> to vector<1x324xf32>
    %c0_2 = arith.constant 0 : index
    %c0_3 = arith.constant 0 : index
    %c0_4 = arith.constant 0 : index
    %2 = vector.load %arg7[%c0_2, %c0_3, %c0_4] : memref<1x1x324xf32, #tpu.memory_space<vmem>>, vector<1x1x324xf32>
    %cst = arith.constant 0.000000e+00 : f32
    %3 = vector.broadcast %cst : f32 to vector<2x4x362xf32>
    %c0_5 = arith.constant 0 : index
    %c0_6 = arith.constant 0 : index
    %c0_7 = arith.constant 0 : index
    %4 = vector.load %arg10[%c0_5, %c0_6, %c0_7] : memref<2x4x362xf32, #tpu.memory_space<vmem>>, vector<2x4x362xf32>
    tpu.vector_store %arg10[%c0_5, %c0_6, %c0_7], %3 {strides = array<i32>} : memref<2x4x362xf32, #tpu.memory_space<vmem>>, vector<2x4x362xf32>,
    %c0_8 = arith.constant 0 : index
    %c0_9 = arith.constant 0 : index
    %c0_10 = arith.constant 0 : index
    %5 = vector.load %arg0[%c0_8, %c0_9, %c0_10] : memref<2x4x362xf32, #tpu.memory_space<vmem>>, vector<1x4x324xf32>
    %6 = vector.shape_cast %5 : vector<1x4x324xf32> to vector<4x324xf32>
    %c0_11 = arith.constant 0 : index
    %c0_12 = arith.constant 0 : index
    %7 = vector.load %arg9[%c0_11, %c0_12] : memref<36x324xf32, #tpu.memory_space<vmem>>, vector<4x324xf32>
    tpu.vector_store %arg9[%c0_11, %c0_12], %6 {strides = array<i32>} : memref<36x324xf32, #tpu.memory_space<vmem>>, vector<4x324xf32>,
    %c0_13 = arith.constant 0 : index
    %c0_14 = arith.constant 0 : index
    %c1 = arith.constant 1 : index
    %8 = vector.load %arg0[%c0_13, %c0_14, %c1] : memref<2x4x362xf32, #tpu.memory_space<vmem>>, vector<1x4x324xf32>
    %9 = vector.shape_cast %8 : vector<1x4x324xf32> to vector<4x324xf32>
    %c4 = arith.constant 4 : index
    %c0_15 = arith.constant 0 : index
    %10 = vector.load %arg9[%c4, %c0_15] : memref<36x324xf32, #tpu.memory_space<vmem>>, vector<4x324xf32>
    tpu.vector_store %arg9[%c4, %c0_15], %9 {strides = array<i32>} : memref<36x324xf32, #tpu.memory_space<vmem>>, vector<4x324xf32>,
    %c0_16 = arith.constant 0 : index
    %c0_17 = arith.constant 0 : index
    %c2 = arith.constant 2 : index
    %11 = vector.load %arg0[%c0_16, %c0_17, %c2] : memref<2x4x362xf32, #tpu.memory_space<vmem>>, vector<1x4x324xf32>
    %12 = vector.shape_cast %11 : vector<1x4x324xf32> to vector<4x324xf32>
    %c8 = arith.constant 8 : index
    %c0_18 = arith.constant 0 : index
    %13 = vector.load %arg9[%c8, %c0_18] : memref<36x324xf32, #tpu.memory_space<vmem>>, vector<4x324xf32>
    tpu.vector_store %arg9[%c8, %c0_18], %12 {strides = array<i32>} : memref<36x324xf32, #tpu.memory_space<vmem>>, vector<4x324xf32>,
    %c0_19 = arith.constant 0 : index
    %c0_20 = arith.constant 0 : index
    %c18 = arith.constant 18 : index
    %14 = vector.load %arg0[%c0_19, %c0_20, %c18] : memref<2x4x362xf32, #tpu.memory_space<vmem>>, vector<1x4x324xf32>
    %15 = vector.shape_cast %14 : vector<1x4x324xf32> to vector<4x324xf32>
    %c12 = arith.constant 12 : index
    %c0_21 = arith.constant 0 : index
    %16 = vector.load %arg9[%c12, %c0_21] : memref<36x324xf32, #tpu.memory_space<vmem>>, vector<4x324xf32>
    tpu.vector_store %arg9[%c12, %c0_21], %15 {strides = array<i32>} : memref<36x324xf32, #tpu.memory_space<vmem>>, vector<4x324xf32>,
    %c0_22 = arith.constant 0 : index
    %c0_23 = arith.constant 0 : index
    %c19 = arith.constant 19 : index
    %17 = vector.load %arg0[%c0_22, %c0_23, %c19] : memref<2x4x362xf32, #tpu.memory_space<vmem>>, vector<1x4x324xf32>
    %18 = vector.shape_cast %17 : vector<1x4x324xf32> to vector<4x324xf32>
    %c16 = arith.constant 16 : index
    %c0_24 = arith.constant 0 : index
    %19 = vector.load %arg9[%c16, %c0_24] : memref<36x324xf32, #tpu.memory_space<vmem>>, vector<4x324xf32>
    tpu.vector_store %arg9[%c16, %c0_24], %18 {strides = array<i32>} : memref<36x324xf32, #tpu.memory_space<vmem>>, vector<4x324xf32>,
    %c0_25 = arith.constant 0 : index
    %c0_26 = arith.constant 0 : index
    %c20 = arith.constant 20 : index
    %20 = vector.load %arg0[%c0_25, %c0_26, %c20] : memref<2x4x362xf32, #tpu.memory_space<vmem>>, vector<1x4x324xf32>
    %21 = vector.shape_cast %20 : vector<1x4x324xf32> to vector<4x324xf32>
    %c20_27 = arith.constant 20 : index
    %c0_28 = arith.constant 0 : index
    %22 = vector.load %arg9[%c20_27, %c0_28] : memref<36x324xf32, #tpu.memory_space<vmem>>, vector<4x324xf32>
    tpu.vector_store %arg9[%c20_27, %c0_28], %21 {strides = array<i32>} : memref<36x324xf32, #tpu.memory_space<vmem>>, vector<4x324xf32>,
    %c0_29 = arith.constant 0 : index
    %c0_30 = arith.constant 0 : index
    %c36 = arith.constant 36 : index
    %23 = vector.load %arg0[%c0_29, %c0_30, %c36] : memref<2x4x362xf32, #tpu.memory_space<vmem>>, vector<1x4x324xf32>
    %24 = vector.shape_cast %23 : vector<1x4x324xf32> to vector<4x324xf32>
    %c24 = arith.constant 24 : index
    %c0_31 = arith.constant 0 : index
    %25 = vector.load %arg9[%c24, %c0_31] : memref<36x324xf32, #tpu.memory_space<vmem>>, vector<4x324xf32>
    tpu.vector_store %arg9[%c24, %c0_31], %24 {strides = array<i32>} : memref<36x324xf32, #tpu.memory_space<vmem>>, vector<4x324xf32>,
    %c0_32 = arith.constant 0 : index
    %c0_33 = arith.constant 0 : index
    %c37 = arith.constant 37 : index
    %26 = vector.load %arg0[%c0_32, %c0_33, %c37] : memref<2x4x362xf32, #tpu.memory_space<vmem>>, vector<1x4x324xf32>
    %27 = vector.shape_cast %26 : vector<1x4x324xf32> to vector<4x324xf32>
    %c28 = arith.constant 28 : index
    %c0_34 = arith.constant 0 : index
    %28 = vector.load %arg9[%c28, %c0_34] : memref<36x324xf32, #tpu.memory_space<vmem>>, vector<4x324xf32>
    tpu.vector_store %arg9[%c28, %c0_34], %27 {strides = array<i32>} : memref<36x324xf32, #tpu.memory_space<vmem>>, vector<4x324xf32>,
    %c0_35 = arith.constant 0 : index
    %c0_36 = arith.constant 0 : index
    %c38 = arith.constant 38 : index
    %29 = vector.load %arg0[%c0_35, %c0_36, %c38] : memref<2x4x362xf32, #tpu.memory_space<vmem>>, vector<1x4x324xf32>
    %30 = vector.shape_cast %29 : vector<1x4x324xf32> to vector<4x324xf32>
    %c32 = arith.constant 32 : index
    %c0_37 = arith.constant 0 : index
    %31 = vector.load %arg9[%c32, %c0_37] : memref<36x324xf32, #tpu.memory_space<vmem>>, vector<4x324xf32>
    tpu.vector_store %arg9[%c32, %c0_37], %30 {strides = array<i32>} : memref<36x324xf32, #tpu.memory_space<vmem>>, vector<4x324xf32>,
    %c0_38 = arith.constant 0 : index
    %c0_39 = arith.constant 0 : index
    %32 = vector.load %arg1[%c0_38, %c0_39] : memref<4x36xbf16, #tpu.memory_space<vmem>>, vector<4x36xbf16>
    %c0_40 = arith.constant 0 : index
    %c0_41 = arith.constant 0 : index
    %33 = vector.load %arg9[%c0_40, %c0_41] : memref<36x324xf32, #tpu.memory_space<vmem>>, vector<36x324xf32>
    %34 = arith.truncf %33 : vector<36x324xf32> to vector<36x324xbf16>
    %cst_42 = arith.constant dense<0.000000e+00> : vector<4x324xf32>
    %35 = tpu.matmul %32, %34, %cst_42 {dimension_numbers = #tpu.dot_dimension_numbers<[1], [0], [0], [1], [0, 0, 1, 1], [], []>} : vector<4x36xbf16>, vector<36x324xbf16>, vector<4x324xf32> -> vector<4x324xf32>
    %c0_43 = arith.constant 0 : index
    %c0_44 = arith.constant 0 : index
    %c0_45 = arith.constant 0 : index
    %36 = vector.load %arg8[%c0_43, %c0_44, %c0_45] : memref<2x4x324xf32, #tpu.memory_space<vmem>>, vector<1x4x324xf32>
    %37 = vector.shape_cast %36 : vector<1x4x324xf32> to vector<4x324xf32>
    %38 = vector.shape_cast %35 : vector<4x324xf32> to vector<1x4x324xf32>
    tpu.vector_store %arg8[%c0_43, %c0_44, %c0_45], %38 {strides = array<i32>} : memref<2x4x324xf32, #tpu.memory_space<vmem>>, vector<1x4x324xf32>,
    %c1_46 = arith.constant 1 : index
    %c0_47 = arith.constant 0 : index
    %c0_48 = arith.constant 0 : index
    %39 = vector.load %arg0[%c1_46, %c0_47, %c0_48] : memref<2x4x362xf32, #tpu.memory_space<vmem>>, vector<1x4x324xf32>
    %40 = vector.shape_cast %39 : vector<1x4x324xf32> to vector<4x324xf32>
    %c0_49 = arith.constant 0 : index
    %c0_50 = arith.constant 0 : index
    %41 = vector.load %arg9[%c0_49, %c0_50] : memref<36x324xf32, #tpu.memory_space<vmem>>, vector<4x324xf32>
    tpu.vector_store %arg9[%c0_49, %c0_50], %40 {strides = array<i32>} : memref<36x324xf32, #tpu.memory_space<vmem>>, vector<4x324xf32>,
    %c1_51 = arith.constant 1 : index
    %c0_52 = arith.constant 0 : index
    %c1_53 = arith.constant 1 : index
    %42 = vector.load %arg0[%c1_51, %c0_52, %c1_53] : memref<2x4x362xf32, #tpu.memory_space<vmem>>, vector<1x4x324xf32>
    %43 = vector.shape_cast %42 : vector<1x4x324xf32> to vector<4x324xf32>
    %c4_54 = arith.constant 4 : index
    %c0_55 = arith.constant 0 : index
    %44 = vector.load %arg9[%c4_54, %c0_55] : memref<36x324xf32, #tpu.memory_space<vmem>>, vector<4x324xf32>
    tpu.vector_store %arg9[%c4_54, %c0_55], %43 {strides = array<i32>} : memref<36x324xf32, #tpu.memory_space<vmem>>, vector<4x324xf32>,
    %c1_56 = arith.constant 1 : index
    %c0_57 = arith.constant 0 : index
    %c2_58 = arith.constant 2 : index
    %45 = vector.load %arg0[%c1_56, %c0_57, %c2_58] : memref<2x4x362xf32, #tpu.memory_space<vmem>>, vector<1x4x324xf32>
    %46 = vector.shape_cast %45 : vector<1x4x324xf32> to vector<4x324xf32>
    %c8_59 = arith.constant 8 : index
    %c0_60 = arith.constant 0 : index
    %47 = vector.load %arg9[%c8_59, %c0_60] : memref<36x324xf32, #tpu.memory_space<vmem>>, vector<4x324xf32>
    tpu.vector_store %arg9[%c8_59, %c0_60], %46 {strides = array<i32>} : memref<36x324xf32, #tpu.memory_space<vmem>>, vector<4x324xf32>,
    %c1_61 = arith.constant 1 : index
    %c0_62 = arith.constant 0 : index
    %c18_63 = arith.constant 18 : index
    %48 = vector.load %arg0[%c1_61, %c0_62, %c18_63] : memref<2x4x362xf32, #tpu.memory_space<vmem>>, vector<1x4x324xf32>
    %49 = vector.shape_cast %48 : vector<1x4x324xf32> to vector<4x324xf32>
    %c12_64 = arith.constant 12 : index
    %c0_65 = arith.constant 0 : index
    %50 = vector.load %arg9[%c12_64, %c0_65] : memref<36x324xf32, #tpu.memory_space<vmem>>, vector<4x324xf32>
    tpu.vector_store %arg9[%c12_64, %c0_65], %49 {strides = array<i32>} : memref<36x324xf32, #tpu.memory_space<vmem>>, vector<4x324xf32>,
    %c1_66 = arith.constant 1 : index
    %c0_67 = arith.constant 0 : index
    %c19_68 = arith.constant 19 : index
    %51 = vector.load %arg0[%c1_66, %c0_67, %c19_68] : memref<2x4x362xf32, #tpu.memory_space<vmem>>, vector<1x4x324xf32>
    %52 = vector.shape_cast %51 : vector<1x4x324xf32> to vector<4x324xf32>
    %c16_69 = arith.constant 16 : index
    %c0_70 = arith.constant 0 : index
    %53 = vector.load %arg9[%c16_69, %c0_70] : memref<36x324xf32, #tpu.memory_space<vmem>>, vector<4x324xf32>
    tpu.vector_store %arg9[%c16_69, %c0_70], %52 {strides = array<i32>} : memref<36x324xf32, #tpu.memory_space<vmem>>, vector<4x324xf32>,
    %c1_71 = arith.constant 1 : index
    %c0_72 = arith.constant 0 : index
    %c20_73 = arith.constant 20 : index
    %54 = vector.load %arg0[%c1_71, %c0_72, %c20_73] : memref<2x4x362xf32, #tpu.memory_space<vmem>>, vector<1x4x324xf32>
    %55 = vector.shape_cast %54 : vector<1x4x324xf32> to vector<4x324xf32>
    %c20_74 = arith.constant 20 : index
    %c0_75 = arith.constant 0 : index
    %56 = vector.load %arg9[%c20_74, %c0_75] : memref<36x324xf32, #tpu.memory_space<vmem>>, vector<4x324xf32>
    tpu.vector_store %arg9[%c20_74, %c0_75], %55 {strides = array<i32>} : memref<36x324xf32, #tpu.memory_space<vmem>>, vector<4x324xf32>,
    %c1_76 = arith.constant 1 : index
    %c0_77 = arith.constant 0 : index
    %c36_78 = arith.constant 36 : index
    %57 = vector.load %arg0[%c1_76, %c0_77, %c36_78] : memref<2x4x362xf32, #tpu.memory_space<vmem>>, vector<1x4x324xf32>
    %58 = vector.shape_cast %57 : vector<1x4x324xf32> to vector<4x324xf32>
    %c24_79 = arith.constant 24 : index
    %c0_80 = arith.constant 0 : index
    %59 = vector.load %arg9[%c24_79, %c0_80] : memref<36x324xf32, #tpu.memory_space<vmem>>, vector<4x324xf32>
    tpu.vector_store %arg9[%c24_79, %c0_80], %58 {strides = array<i32>} : memref<36x324xf32, #tpu.memory_space<vmem>>, vector<4x324xf32>,
    %c1_81 = arith.constant 1 : index
    %c0_82 = arith.constant 0 : index
    %c37_83 = arith.constant 37 : index
    %60 = vector.load %arg0[%c1_81, %c0_82, %c37_83] : memref<2x4x362xf32, #tpu.memory_space<vmem>>, vector<1x4x324xf32>
    %61 = vector.shape_cast %60 : vector<1x4x324xf32> to vector<4x324xf32>
    %c28_84 = arith.constant 28 : index
    %c0_85 = arith.constant 0 : index
    %62 = vector.load %arg9[%c28_84, %c0_85] : memref<36x324xf32, #tpu.memory_space<vmem>>, vector<4x324xf32>
    tpu.vector_store %arg9[%c28_84, %c0_85], %61 {strides = array<i32>} : memref<36x324xf32, #tpu.memory_space<vmem>>, vector<4x324xf32>,
    %c1_86 = arith.constant 1 : index
    %c0_87 = arith.constant 0 : index
    %c38_88 = arith.constant 38 : index
    %63 = vector.load %arg0[%c1_86, %c0_87, %c38_88] : memref<2x4x362xf32, #tpu.memory_space<vmem>>, vector<1x4x324xf32>
    %64 = vector.shape_cast %63 : vector<1x4x324xf32> to vector<4x324xf32>
    %c32_89 = arith.constant 32 : index
    %c0_90 = arith.constant 0 : index
    %65 = vector.load %arg9[%c32_89, %c0_90] : memref<36x324xf32, #tpu.memory_space<vmem>>, vector<4x324xf32>
    tpu.vector_store %arg9[%c32_89, %c0_90], %64 {strides = array<i32>} : memref<36x324xf32, #tpu.memory_space<vmem>>, vector<4x324xf32>,
    %c0_91 = arith.constant 0 : index
    %c0_92 = arith.constant 0 : index
    %66 = vector.load %arg1[%c0_91, %c0_92] : memref<4x36xbf16, #tpu.memory_space<vmem>>, vector<4x36xbf16>
    %c0_93 = arith.constant 0 : index
    %c0_94 = arith.constant 0 : index
    %67 = vector.load %arg9[%c0_93, %c0_94] : memref<36x324xf32, #tpu.memory_space<vmem>>, vector<36x324xf32>
    %68 = arith.truncf %67 : vector<36x324xf32> to vector<36x324xbf16>
    %cst_95 = arith.constant dense<0.000000e+00> : vector<4x324xf32>
    %69 = tpu.matmul %66, %68, %cst_95 {dimension_numbers = #tpu.dot_dimension_numbers<[1], [0], [0], [1], [0, 0, 1, 1], [], []>} : vector<4x36xbf16>, vector<36x324xbf16>, vector<4x324xf32> -> vector<4x324xf32>
    %c1_96 = arith.constant 1 : index
    %c0_97 = arith.constant 0 : index
    %c0_98 = arith.constant 0 : index
    %70 = vector.load %arg8[%c1_96, %c0_97, %c0_98] : memref<2x4x324xf32, #tpu.memory_space<vmem>>, vector<1x4x324xf32>
    %71 = vector.shape_cast %70 : vector<1x4x324xf32> to vector<4x324xf32>
    %72 = vector.shape_cast %69 : vector<4x324xf32> to vector<1x4x324xf32>
    tpu.vector_store %arg8[%c1_96, %c0_97, %c0_98], %72 {strides = array<i32>} : memref<2x4x324xf32, #tpu.memory_space<vmem>>, vector<1x4x324xf32>,
    %c0_99 = arith.constant 0 : index
    %c0_100 = arith.constant 0 : index
    %c0_101 = arith.constant 0 : index
    %73 = vector.load %arg8[%c0_99, %c0_100, %c0_101] : memref<2x4x324xf32, #tpu.memory_space<vmem>>, vector<2x4x324xf32>
    %74 = vector.broadcast %2 : vector<1x1x324xf32> to vector<2x4x324xf32>
    %75 = arith.mulf %73, %74 : vector<2x4x324xf32>
    %cst_102 = arith.constant dense<0.000000e+00> : vector<2x4xf32>
    %76 = vector.multi_reduction <add>, %75, %cst_102 [2] : vector<2x4x324xf32> to vector<2x4xf32>
    %77 = vector.shape_cast %76 : vector<2x4xf32> to vector<2x4x1xf32>
    %cst_103 = arith.constant dense<0.000000e+00> : vector<4x1xf32>
    %78 = vector.multi_reduction <add>, %77, %cst_103 [0] : vector<2x4x1xf32> to vector<4x1xf32>
    %79 = vector.shape_cast %78 : vector<4x1xf32> to vector<1x4x1xf32>
    %cst_104 = arith.constant 0.001953125 : f32
    %80 = vector.broadcast %cst_104 : f32 to vector<1x4x1xf32>
    %81 = arith.mulf %79, %80 : vector<1x4x1xf32>
    %82 = vector.broadcast %81 : vector<1x4x1xf32> to vector<2x4x324xf32>
    %83 = arith.subf %73, %82 : vector<2x4x324xf32>
    %84 = vector.broadcast %2 : vector<1x1x324xf32> to vector<2x4x324xf32>
    %85 = arith.mulf %83, %84 : vector<2x4x324xf32>
    %86 = arith.mulf %85, %85 : vector<2x4x324xf32>
    %cst_105 = arith.constant dense<0.000000e+00> : vector<2x4xf32>
    %87 = vector.multi_reduction <add>, %86, %cst_105 [2] : vector<2x4x324xf32> to vector<2x4xf32>
    %88 = vector.shape_cast %87 : vector<2x4xf32> to vector<2x4x1xf32>
    %cst_106 = arith.constant dense<0.000000e+00> : vector<4x1xf32>
    %89 = vector.multi_reduction <add>, %88, %cst_106 [0] : vector<2x4x1xf32> to vector<4x1xf32>
    %90 = vector.shape_cast %89 : vector<4x1xf32> to vector<1x4x1xf32>
    %cst_107 = arith.constant 0.001953125 : f32
    %91 = vector.broadcast %cst_107 : f32 to vector<1x4x1xf32>
    %92 = arith.mulf %90, %91 : vector<1x4x1xf32>
    %c0_108 = arith.constant 0 : index
    %c0_109 = arith.constant 0 : index
    %c0_110 = arith.constant 0 : index
    %93 = vector.load %arg3[%c0_108, %c0_109, %c0_110] : memref<1x4x1xf32, #tpu.memory_space<vmem>>, vector<1x4x1xf32>
    %94 = vector.shape_cast %93 : vector<1x4x1xf32> to vector<4x1xf32>
    %95 = vector.shape_cast %92 : vector<1x4x1xf32> to vector<4x1xf32>
    %cst_111 = arith.constant 9.99999974E-6 : f32
    %96 = vector.broadcast %cst_111 : f32 to vector<4x1xf32>
    %97 = arith.addf %95, %96 : vector<4x1xf32>
    %98 = math.rsqrt %97 : vector<4x1xf32>
    %99 = arith.mulf %94, %98 : vector<4x1xf32>
    %c0_112 = arith.constant 0 : index
    %c0_113 = arith.constant 0 : index
    %c0_114 = arith.constant 0 : index
    %100 = vector.load %arg4[%c0_112, %c0_113, %c0_114] : memref<1x4x1xf32, #tpu.memory_space<vmem>>, vector<1x4x1xf32>
    %101 = vector.shape_cast %100 : vector<1x4x1xf32> to vector<4x1xf32>
    %102 = vector.shape_cast %81 : vector<1x4x1xf32> to vector<4x1xf32>
    %103 = arith.mulf %102, %99 : vector<4x1xf32>
    %104 = arith.subf %101, %103 : vector<4x1xf32>
    %c0_115 = arith.constant 0 : index
    %c0_116 = arith.constant 0 : index
    %c0_117 = arith.constant 0 : index
    %105 = vector.load %arg8[%c0_115, %c0_116, %c0_117] : memref<2x4x324xf32, #tpu.memory_space<vmem>>, vector<1x4x324xf32>
    %106 = vector.shape_cast %105 : vector<1x4x324xf32> to vector<4x324xf32>
    %107 = vector.broadcast %99 : vector<4x1xf32> to vector<4x324xf32>
    %108 = arith.mulf %106, %107 : vector<4x324xf32>
    %109 = vector.broadcast %104 : vector<4x1xf32> to vector<4x324xf32>
    %110 = arith.addf %108, %109 : vector<4x324xf32>
    %cst_118 = arith.constant 0.000000e+00 : f32
    %111 = vector.broadcast %cst_118 : f32 to vector<4x324xf32>
    %112 = arith.maximumf %110, %111 : vector<4x324xf32>
    %113 = vector.broadcast %1 : vector<1x324xf32> to vector<4x324xf32>
    %114 = arith.mulf %112, %113 : vector<4x324xf32>
    %c0_119 = arith.constant 0 : index
    %c0_120 = arith.constant 0 : index
    %c19_121 = arith.constant 19 : index
    %115 = vector.load %arg10[%c0_119, %c0_120, %c19_121] : memref<2x4x362xf32, #tpu.memory_space<vmem>>, vector<1x4x324xf32>
    %116 = vector.shape_cast %115 : vector<1x4x324xf32> to vector<4x324xf32>
    %117 = vector.shape_cast %114 : vector<4x324xf32> to vector<1x4x324xf32>
    tpu.vector_store %arg10[%c0_119, %c0_120, %c19_121], %117 {strides = array<i32>} : memref<2x4x362xf32, #tpu.memory_space<vmem>>, vector<1x4x324xf32>,
    %c1_122 = arith.constant 1 : index
    %c0_123 = arith.constant 0 : index
    %c0_124 = arith.constant 0 : index
    %118 = vector.load %arg8[%c1_122, %c0_123, %c0_124] : memref<2x4x324xf32, #tpu.memory_space<vmem>>, vector<1x4x324xf32>
    %119 = vector.shape_cast %118 : vector<1x4x324xf32> to vector<4x324xf32>
    %120 = vector.broadcast %99 : vector<4x1xf32> to vector<4x324xf32>
    %121 = arith.mulf %119, %120 : vector<4x324xf32>
    %122 = vector.broadcast %104 : vector<4x1xf32> to vector<4x324xf32>
    %123 = arith.addf %121, %122 : vector<4x324xf32>
    %cst_125 = arith.constant 0.000000e+00 : f32
    %124 = vector.broadcast %cst_125 : f32 to vector<4x324xf32>
    %125 = arith.maximumf %123, %124 : vector<4x324xf32>
    %126 = vector.broadcast %1 : vector<1x324xf32> to vector<4x324xf32>
    %127 = arith.mulf %125, %126 : vector<4x324xf32>
    %c1_126 = arith.constant 1 : index
    %c0_127 = arith.constant 0 : index
    %c19_128 = arith.constant 19 : index
    %128 = vector.load %arg10[%c1_126, %c0_127, %c19_128] : memref<2x4x362xf32, #tpu.memory_space<vmem>>, vector<1x4x324xf32>
    %129 = vector.shape_cast %128 : vector<1x4x324xf32> to vector<4x324xf32>
    %130 = vector.shape_cast %127 : vector<4x324xf32> to vector<1x4x324xf32>
    tpu.vector_store %arg10[%c1_126, %c0_127, %c19_128], %130 {strides = array<i32>} : memref<2x4x362xf32, #tpu.memory_space<vmem>>, vector<1x4x324xf32>,
    %c0_129 = arith.constant 0 : index
    %c0_130 = arith.constant 0 : index
    %c0_131 = arith.constant 0 : index
    %131 = vector.load %arg10[%c0_129, %c0_130, %c0_131] : memref<2x4x362xf32, #tpu.memory_space<vmem>>, vector<1x4x324xf32>
    %132 = vector.shape_cast %131 : vector<1x4x324xf32> to vector<4x324xf32>
    %c0_132 = arith.constant 0 : index
    %c0_133 = arith.constant 0 : index
    %133 = vector.load %arg9[%c0_132, %c0_133] : memref<36x324xf32, #tpu.memory_space<vmem>>, vector<4x324xf32>
    tpu.vector_store %arg9[%c0_132, %c0_133], %132 {strides = array<i32>} : memref<36x324xf32, #tpu.memory_space<vmem>>, vector<4x324xf32>,
    %c0_134 = arith.constant 0 : index
    %c0_135 = arith.constant 0 : index
    %c1_136 = arith.constant 1 : index
    %134 = vector.load %arg10[%c0_134, %c0_135, %c1_136] : memref<2x4x362xf32, #tpu.memory_space<vmem>>, vector<1x4x324xf32>
    %135 = vector.shape_cast %134 : vector<1x4x324xf32> to vector<4x324xf32>
    %c4_137 = arith.constant 4 : index
    %c0_138 = arith.constant 0 : index
    %136 = vector.load %arg9[%c4_137, %c0_138] : memref<36x324xf32, #tpu.memory_space<vmem>>, vector<4x324xf32>
    tpu.vector_store %arg9[%c4_137, %c0_138], %135 {strides = array<i32>} : memref<36x324xf32, #tpu.memory_space<vmem>>, vector<4x324xf32>,
    %c0_139 = arith.constant 0 : index
    %c0_140 = arith.constant 0 : index
    %c2_141 = arith.constant 2 : index
    %137 = vector.load %arg10[%c0_139, %c0_140, %c2_141] : memref<2x4x362xf32, #tpu.memory_space<vmem>>, vector<1x4x324xf32>
    %138 = vector.shape_cast %137 : vector<1x4x324xf32> to vector<4x324xf32>
    %c8_142 = arith.constant 8 : index
    %c0_143 = arith.constant 0 : index
    %139 = vector.load %arg9[%c8_142, %c0_143] : memref<36x324xf32, #tpu.memory_space<vmem>>, vector<4x324xf32>
    tpu.vector_store %arg9[%c8_142, %c0_143], %138 {strides = array<i32>} : memref<36x324xf32, #tpu.memory_space<vmem>>, vector<4x324xf32>,
    %c0_144 = arith.constant 0 : index
    %c0_145 = arith.constant 0 : index
    %c18_146 = arith.constant 18 : index
    %140 = vector.load %arg10[%c0_144, %c0_145, %c18_146] : memref<2x4x362xf32, #tpu.memory_space<vmem>>, vector<1x4x324xf32>
    %141 = vector.shape_cast %140 : vector<1x4x324xf32> to vector<4x324xf32>
    %c12_147 = arith.constant 12 : index
    %c0_148 = arith.constant 0 : index
    %142 = vector.load %arg9[%c12_147, %c0_148] : memref<36x324xf32, #tpu.memory_space<vmem>>, vector<4x324xf32>
    tpu.vector_store %arg9[%c12_147, %c0_148], %141 {strides = array<i32>} : memref<36x324xf32, #tpu.memory_space<vmem>>, vector<4x324xf32>,
    %c0_149 = arith.constant 0 : index
    %c0_150 = arith.constant 0 : index
    %c19_151 = arith.constant 19 : index
    %143 = vector.load %arg10[%c0_149, %c0_150, %c19_151] : memref<2x4x362xf32, #tpu.memory_space<vmem>>, vector<1x4x324xf32>
    %144 = vector.shape_cast %143 : vector<1x4x324xf32> to vector<4x324xf32>
    %c16_152 = arith.constant 16 : index
    %c0_153 = arith.constant 0 : index
    %145 = vector.load %arg9[%c16_152, %c0_153] : memref<36x324xf32, #tpu.memory_space<vmem>>, vector<4x324xf32>
    tpu.vector_store %arg9[%c16_152, %c0_153], %144 {strides = array<i32>} : memref<36x324xf32, #tpu.memory_space<vmem>>, vector<4x324xf32>,
    %c0_154 = arith.constant 0 : index
    %c0_155 = arith.constant 0 : index
    %c20_156 = arith.constant 20 : index
    %146 = vector.load %arg10[%c0_154, %c0_155, %c20_156] : memref<2x4x362xf32, #tpu.memory_space<vmem>>, vector<1x4x324xf32>
    %147 = vector.shape_cast %146 : vector<1x4x324xf32> to vector<4x324xf32>
    %c20_157 = arith.constant 20 : index
    %c0_158 = arith.constant 0 : index
    %148 = vector.load %arg9[%c20_157, %c0_158] : memref<36x324xf32, #tpu.memory_space<vmem>>, vector<4x324xf32>
    tpu.vector_store %arg9[%c20_157, %c0_158], %147 {strides = array<i32>} : memref<36x324xf32, #tpu.memory_space<vmem>>, vector<4x324xf32>,
    %c0_159 = arith.constant 0 : index
    %c0_160 = arith.constant 0 : index
    %c36_161 = arith.constant 36 : index
    %149 = vector.load %arg10[%c0_159, %c0_160, %c36_161] : memref<2x4x362xf32, #tpu.memory_space<vmem>>, vector<1x4x324xf32>
    %150 = vector.shape_cast %149 : vector<1x4x324xf32> to vector<4x324xf32>
    %c24_162 = arith.constant 24 : index
    %c0_163 = arith.constant 0 : index
    %151 = vector.load %arg9[%c24_162, %c0_163] : memref<36x324xf32, #tpu.memory_space<vmem>>, vector<4x324xf32>
    tpu.vector_store %arg9[%c24_162, %c0_163], %150 {strides = array<i32>} : memref<36x324xf32, #tpu.memory_space<vmem>>, vector<4x324xf32>,
    %c0_164 = arith.constant 0 : index
    %c0_165 = arith.constant 0 : index
    %c37_166 = arith.constant 37 : index
    %152 = vector.load %arg10[%c0_164, %c0_165, %c37_166] : memref<2x4x362xf32, #tpu.memory_space<vmem>>, vector<1x4x324xf32>
    %153 = vector.shape_cast %152 : vector<1x4x324xf32> to vector<4x324xf32>
    %c28_167 = arith.constant 28 : index
    %c0_168 = arith.constant 0 : index
    %154 = vector.load %arg9[%c28_167, %c0_168] : memref<36x324xf32, #tpu.memory_space<vmem>>, vector<4x324xf32>
    tpu.vector_store %arg9[%c28_167, %c0_168], %153 {strides = array<i32>} : memref<36x324xf32, #tpu.memory_space<vmem>>, vector<4x324xf32>,
    %c0_169 = arith.constant 0 : index
    %c0_170 = arith.constant 0 : index
    %c38_171 = arith.constant 38 : index
    %155 = vector.load %arg10[%c0_169, %c0_170, %c38_171] : memref<2x4x362xf32, #tpu.memory_space<vmem>>, vector<1x4x324xf32>
    %156 = vector.shape_cast %155 : vector<1x4x324xf32> to vector<4x324xf32>
    %c32_172 = arith.constant 32 : index
    %c0_173 = arith.constant 0 : index
    %157 = vector.load %arg9[%c32_172, %c0_173] : memref<36x324xf32, #tpu.memory_space<vmem>>, vector<4x324xf32>
    tpu.vector_store %arg9[%c32_172, %c0_173], %156 {strides = array<i32>} : memref<36x324xf32, #tpu.memory_space<vmem>>, vector<4x324xf32>,
    %c0_174 = arith.constant 0 : index
    %c0_175 = arith.constant 0 : index
    %158 = vector.load %arg2[%c0_174, %c0_175] : memref<4x36xbf16, #tpu.memory_space<vmem>>, vector<4x36xbf16>
    %c0_176 = arith.constant 0 : index
    %c0_177 = arith.constant 0 : index
    %159 = vector.load %arg9[%c0_176, %c0_177] : memref<36x324xf32, #tpu.memory_space<vmem>>, vector<36x324xf32>
    %160 = arith.truncf %159 : vector<36x324xf32> to vector<36x324xbf16>
    %cst_178 = arith.constant dense<0.000000e+00> : vector<4x324xf32>
    %161 = tpu.matmul %158, %160, %cst_178 {dimension_numbers = #tpu.dot_dimension_numbers<[1], [0], [0], [1], [0, 0, 1, 1], [], []>} : vector<4x36xbf16>, vector<36x324xbf16>, vector<4x324xf32> -> vector<4x324xf32>
    %c0_179 = arith.constant 0 : index
    %c0_180 = arith.constant 0 : index
    %c0_181 = arith.constant 0 : index
    %162 = vector.load %arg8[%c0_179, %c0_180, %c0_181] : memref<2x4x324xf32, #tpu.memory_space<vmem>>, vector<1x4x324xf32>
    %163 = vector.shape_cast %162 : vector<1x4x324xf32> to vector<4x324xf32>
    %164 = vector.shape_cast %161 : vector<4x324xf32> to vector<1x4x324xf32>
    tpu.vector_store %arg8[%c0_179, %c0_180, %c0_181], %164 {strides = array<i32>} : memref<2x4x324xf32, #tpu.memory_space<vmem>>, vector<1x4x324xf32>,
    %c1_182 = arith.constant 1 : index
    %c0_183 = arith.constant 0 : index
    %c0_184 = arith.constant 0 : index
    %165 = vector.load %arg10[%c1_182, %c0_183, %c0_184] : memref<2x4x362xf32, #tpu.memory_space<vmem>>, vector<1x4x324xf32>
    %166 = vector.shape_cast %165 : vector<1x4x324xf32> to vector<4x324xf32>
    %c0_185 = arith.constant 0 : index
    %c0_186 = arith.constant 0 : index
    %167 = vector.load %arg9[%c0_185, %c0_186] : memref<36x324xf32, #tpu.memory_space<vmem>>, vector<4x324xf32>
    tpu.vector_store %arg9[%c0_185, %c0_186], %166 {strides = array<i32>} : memref<36x324xf32, #tpu.memory_space<vmem>>, vector<4x324xf32>,
    %c1_187 = arith.constant 1 : index
    %c0_188 = arith.constant 0 : index
    %c1_189 = arith.constant 1 : index
    %168 = vector.load %arg10[%c1_187, %c0_188, %c1_189] : memref<2x4x362xf32, #tpu.memory_space<vmem>>, vector<1x4x324xf32>
    %169 = vector.shape_cast %168 : vector<1x4x324xf32> to vector<4x324xf32>
    %c4_190 = arith.constant 4 : index
    %c0_191 = arith.constant 0 : index
    %170 = vector.load %arg9[%c4_190, %c0_191] : memref<36x324xf32, #tpu.memory_space<vmem>>, vector<4x324xf32>
    tpu.vector_store %arg9[%c4_190, %c0_191], %169 {strides = array<i32>} : memref<36x324xf32, #tpu.memory_space<vmem>>, vector<4x324xf32>,
    %c1_192 = arith.constant 1 : index
    %c0_193 = arith.constant 0 : index
    %c2_194 = arith.constant 2 : index
    %171 = vector.load %arg10[%c1_192, %c0_193, %c2_194] : memref<2x4x362xf32, #tpu.memory_space<vmem>>, vector<1x4x324xf32>
    %172 = vector.shape_cast %171 : vector<1x4x324xf32> to vector<4x324xf32>
    %c8_195 = arith.constant 8 : index
    %c0_196 = arith.constant 0 : index
    %173 = vector.load %arg9[%c8_195, %c0_196] : memref<36x324xf32, #tpu.memory_space<vmem>>, vector<4x324xf32>
    tpu.vector_store %arg9[%c8_195, %c0_196], %172 {strides = array<i32>} : memref<36x324xf32, #tpu.memory_space<vmem>>, vector<4x324xf32>,
    %c1_197 = arith.constant 1 : index
    %c0_198 = arith.constant 0 : index
    %c18_199 = arith.constant 18 : index
    %174 = vector.load %arg10[%c1_197, %c0_198, %c18_199] : memref<2x4x362xf32, #tpu.memory_space<vmem>>, vector<1x4x324xf32>
    %175 = vector.shape_cast %174 : vector<1x4x324xf32> to vector<4x324xf32>
    %c12_200 = arith.constant 12 : index
    %c0_201 = arith.constant 0 : index
    %176 = vector.load %arg9[%c12_200, %c0_201] : memref<36x324xf32, #tpu.memory_space<vmem>>, vector<4x324xf32>
    tpu.vector_store %arg9[%c12_200, %c0_201], %175 {strides = array<i32>} : memref<36x324xf32, #tpu.memory_space<vmem>>, vector<4x324xf32>,
    %c1_202 = arith.constant 1 : index
    %c0_203 = arith.constant 0 : index
    %c19_204 = arith.constant 19 : index
    %177 = vector.load %arg10[%c1_202, %c0_203, %c19_204] : memref<2x4x362xf32, #tpu.memory_space<vmem>>, vector<1x4x324xf32>
    %178 = vector.shape_cast %177 : vector<1x4x324xf32> to vector<4x324xf32>
    %c16_205 = arith.constant 16 : index
    %c0_206 = arith.constant 0 : index
    %179 = vector.load %arg9[%c16_205, %c0_206] : memref<36x324xf32, #tpu.memory_space<vmem>>, vector<4x324xf32>
    tpu.vector_store %arg9[%c16_205, %c0_206], %178 {strides = array<i32>} : memref<36x324xf32, #tpu.memory_space<vmem>>, vector<4x324xf32>,
    %c1_207 = arith.constant 1 : index
    %c0_208 = arith.constant 0 : index
    %c20_209 = arith.constant 20 : index
    %180 = vector.load %arg10[%c1_207, %c0_208, %c20_209] : memref<2x4x362xf32, #tpu.memory_space<vmem>>, vector<1x4x324xf32>
    %181 = vector.shape_cast %180 : vector<1x4x324xf32> to vector<4x324xf32>
    %c20_210 = arith.constant 20 : index
    %c0_211 = arith.constant 0 : index
    %182 = vector.load %arg9[%c20_210, %c0_211] : memref<36x324xf32, #tpu.memory_space<vmem>>, vector<4x324xf32>
    tpu.vector_store %arg9[%c20_210, %c0_211], %181 {strides = array<i32>} : memref<36x324xf32, #tpu.memory_space<vmem>>, vector<4x324xf32>,
    %c1_212 = arith.constant 1 : index
    %c0_213 = arith.constant 0 : index
    %c36_214 = arith.constant 36 : index
    %183 = vector.load %arg10[%c1_212, %c0_213, %c36_214] : memref<2x4x362xf32, #tpu.memory_space<vmem>>, vector<1x4x324xf32>
    %184 = vector.shape_cast %183 : vector<1x4x324xf32> to vector<4x324xf32>
    %c24_215 = arith.constant 24 : index
    %c0_216 = arith.constant 0 : index
    %185 = vector.load %arg9[%c24_215, %c0_216] : memref<36x324xf32, #tpu.memory_space<vmem>>, vector<4x324xf32>
    tpu.vector_store %arg9[%c24_215, %c0_216], %184 {strides = array<i32>} : memref<36x324xf32, #tpu.memory_space<vmem>>, vector<4x324xf32>,
    %c1_217 = arith.constant 1 : index
    %c0_218 = arith.constant 0 : index
    %c37_219 = arith.constant 37 : index
    %186 = vector.load %arg10[%c1_217, %c0_218, %c37_219] : memref<2x4x362xf32, #tpu.memory_space<vmem>>, vector<1x4x324xf32>
    %187 = vector.shape_cast %186 : vector<1x4x324xf32> to vector<4x324xf32>
    %c28_220 = arith.constant 28 : index
    %c0_221 = arith.constant 0 : index
    %188 = vector.load %arg9[%c28_220, %c0_221] : memref<36x324xf32, #tpu.memory_space<vmem>>, vector<4x324xf32>
    tpu.vector_store %arg9[%c28_220, %c0_221], %187 {strides = array<i32>} : memref<36x324xf32, #tpu.memory_space<vmem>>, vector<4x324xf32>,
    %c1_222 = arith.constant 1 : index
    %c0_223 = arith.constant 0 : index
    %c38_224 = arith.constant 38 : index
    %189 = vector.load %arg10[%c1_222, %c0_223, %c38_224] : memref<2x4x362xf32, #tpu.memory_space<vmem>>, vector<1x4x324xf32>
    %190 = vector.shape_cast %189 : vector<1x4x324xf32> to vector<4x324xf32>
    %c32_225 = arith.constant 32 : index
    %c0_226 = arith.constant 0 : index
    %191 = vector.load %arg9[%c32_225, %c0_226] : memref<36x324xf32, #tpu.memory_space<vmem>>, vector<4x324xf32>
    tpu.vector_store %arg9[%c32_225, %c0_226], %190 {strides = array<i32>} : memref<36x324xf32, #tpu.memory_space<vmem>>, vector<4x324xf32>,
    %c0_227 = arith.constant 0 : index
    %c0_228 = arith.constant 0 : index
    %192 = vector.load %arg2[%c0_227, %c0_228] : memref<4x36xbf16, #tpu.memory_space<vmem>>, vector<4x36xbf16>
    %c0_229 = arith.constant 0 : index
    %c0_230 = arith.constant 0 : index
    %193 = vector.load %arg9[%c0_229, %c0_230] : memref<36x324xf32, #tpu.memory_space<vmem>>, vector<36x324xf32>
    %194 = arith.truncf %193 : vector<36x324xf32> to vector<36x324xbf16>
    %cst_231 = arith.constant dense<0.000000e+00> : vector<4x324xf32>
    %195 = tpu.matmul %192, %194, %cst_231 {dimension_numbers = #tpu.dot_dimension_numbers<[1], [0], [0], [1], [0, 0, 1, 1], [], []>} : vector<4x36xbf16>, vector<36x324xbf16>, vector<4x324xf32> -> vector<4x324xf32>
    %c1_232 = arith.constant 1 : index
    %c0_233 = arith.constant 0 : index
    %c0_234 = arith.constant 0 : index
    %196 = vector.load %arg8[%c1_232, %c0_233, %c0_234] : memref<2x4x324xf32, #tpu.memory_space<vmem>>, vector<1x4x324xf32>
    %197 = vector.shape_cast %196 : vector<1x4x324xf32> to vector<4x324xf32>
    %198 = vector.shape_cast %195 : vector<4x324xf32> to vector<1x4x324xf32>
    tpu.vector_store %arg8[%c1_232, %c0_233, %c0_234], %198 {strides = array<i32>} : memref<2x4x324xf32, #tpu.memory_space<vmem>>, vector<1x4x324xf32>,
    %c0_235 = arith.constant 0 : index
    %c0_236 = arith.constant 0 : index
    %c0_237 = arith.constant 0 : index
    %199 = vector.load %arg8[%c0_235, %c0_236, %c0_237] : memref<2x4x324xf32, #tpu.memory_space<vmem>>, vector<2x4x324xf32>
    %200 = vector.broadcast %2 : vector<1x1x324xf32> to vector<2x4x324xf32>
    %201 = arith.mulf %199, %200 : vector<2x4x324xf32>
    %cst_238 = arith.constant dense<0.000000e+00> : vector<2x4xf32>
    %202 = vector.multi_reduction <add>, %201, %cst_238 [2] : vector<2x4x324xf32> to vector<2x4xf32>
    %203 = vector.shape_cast %202 : vector<2x4xf32> to vector<2x4x1xf32>
    %cst_239 = arith.constant dense<0.000000e+00> : vector<4x1xf32>
    %204 = vector.multi_reduction <add>, %203, %cst_239 [0] : vector<2x4x1xf32> to vector<4x1xf32>
    %205 = vector.shape_cast %204 : vector<4x1xf32> to vector<1x4x1xf32>
    %cst_240 = arith.constant 0.001953125 : f32
    %206 = vector.broadcast %cst_240 : f32 to vector<1x4x1xf32>
    %207 = arith.mulf %205, %206 : vector<1x4x1xf32>
    %208 = vector.broadcast %207 : vector<1x4x1xf32> to vector<2x4x324xf32>
    %209 = arith.subf %199, %208 : vector<2x4x324xf32>
    %210 = vector.broadcast %2 : vector<1x1x324xf32> to vector<2x4x324xf32>
    %211 = arith.mulf %209, %210 : vector<2x4x324xf32>
    %212 = arith.mulf %211, %211 : vector<2x4x324xf32>
    %cst_241 = arith.constant dense<0.000000e+00> : vector<2x4xf32>
    %213 = vector.multi_reduction <add>, %212, %cst_241 [2] : vector<2x4x324xf32> to vector<2x4xf32>
    %214 = vector.shape_cast %213 : vector<2x4xf32> to vector<2x4x1xf32>
    %cst_242 = arith.constant dense<0.000000e+00> : vector<4x1xf32>
    %215 = vector.multi_reduction <add>, %214, %cst_242 [0] : vector<2x4x1xf32> to vector<4x1xf32>
    %216 = vector.shape_cast %215 : vector<4x1xf32> to vector<1x4x1xf32>
    %cst_243 = arith.constant 0.001953125 : f32
    %217 = vector.broadcast %cst_243 : f32 to vector<1x4x1xf32>
    %218 = arith.mulf %216, %217 : vector<1x4x1xf32>
    %c0_244 = arith.constant 0 : index
    %c0_245 = arith.constant 0 : index
    %c0_246 = arith.constant 0 : index
    %219 = vector.load %arg5[%c0_244, %c0_245, %c0_246] : memref<1x4x1xf32, #tpu.memory_space<vmem>>, vector<1x4x1xf32>
    %220 = vector.shape_cast %219 : vector<1x4x1xf32> to vector<4x1xf32>
    %221 = vector.shape_cast %218 : vector<1x4x1xf32> to vector<4x1xf32>
    %cst_247 = arith.constant 9.99999974E-6 : f32
    %222 = vector.broadcast %cst_247 : f32 to vector<4x1xf32>
    %223 = arith.addf %221, %222 : vector<4x1xf32>
    %224 = math.rsqrt %223 : vector<4x1xf32>
    %225 = arith.mulf %220, %224 : vector<4x1xf32>
    %c0_248 = arith.constant 0 : index
    %c0_249 = arith.constant 0 : index
    %c0_250 = arith.constant 0 : index
    %226 = vector.load %arg6[%c0_248, %c0_249, %c0_250] : memref<1x4x1xf32, #tpu.memory_space<vmem>>, vector<1x4x1xf32>
    %227 = vector.shape_cast %226 : vector<1x4x1xf32> to vector<4x1xf32>
    %228 = vector.shape_cast %207 : vector<1x4x1xf32> to vector<4x1xf32>
    %229 = arith.mulf %228, %225 : vector<4x1xf32>
    %230 = arith.subf %227, %229 : vector<4x1xf32>
    %c0_251 = arith.constant 0 : index
    %c0_252 = arith.constant 0 : index
    %c19_253 = arith.constant 19 : index
    %231 = vector.load %arg0[%c0_251, %c0_252, %c19_253] : memref<2x4x362xf32, #tpu.memory_space<vmem>>, vector<1x4x324xf32>
    %232 = vector.shape_cast %231 : vector<1x4x324xf32> to vector<4x324xf32>
    %c0_254 = arith.constant 0 : index
    %c0_255 = arith.constant 0 : index
    %c0_256 = arith.constant 0 : index
    %233 = vector.load %arg8[%c0_254, %c0_255, %c0_256] : memref<2x4x324xf32, #tpu.memory_space<vmem>>, vector<1x4x324xf32>
    %234 = vector.shape_cast %233 : vector<1x4x324xf32> to vector<4x324xf32>
    %235 = vector.broadcast %225 : vector<4x1xf32> to vector<4x324xf32>
    %236 = arith.mulf %234, %235 : vector<4x324xf32>
    %237 = vector.broadcast %230 : vector<4x1xf32> to vector<4x324xf32>
    %238 = arith.addf %236, %237 : vector<4x324xf32>
    %239 = arith.addf %238, %232 : vector<4x324xf32>
    %c0_257 = arith.constant 0 : index
    %c0_258 = arith.constant 0 : index
    %c0_259 = arith.constant 0 : index
    %240 = vector.load %arg8[%c0_257, %c0_258, %c0_259] : memref<2x4x324xf32, #tpu.memory_space<vmem>>, vector<1x4x324xf32>
    %241 = vector.shape_cast %240 : vector<1x4x324xf32> to vector<4x324xf32>
    %242 = vector.shape_cast %239 : vector<4x324xf32> to vector<1x4x324xf32>
    tpu.vector_store %arg8[%c0_257, %c0_258, %c0_259], %242 {strides = array<i32>} : memref<2x4x324xf32, #tpu.memory_space<vmem>>, vector<1x4x324xf32>,
    %c1_260 = arith.constant 1 : index
    %c0_261 = arith.constant 0 : index
    %c19_262 = arith.constant 19 : index
    %243 = vector.load %arg0[%c1_260, %c0_261, %c19_262] : memref<2x4x362xf32, #tpu.memory_space<vmem>>, vector<1x4x324xf32>
    %244 = vector.shape_cast %243 : vector<1x4x324xf32> to vector<4x324xf32>
    %c1_263 = arith.constant 1 : index
    %c0_264 = arith.constant 0 : index
    %c0_265 = arith.constant 0 : index
    %245 = vector.load %arg8[%c1_263, %c0_264, %c0_265] : memref<2x4x324xf32, #tpu.memory_space<vmem>>, vector<1x4x324xf32>
    %246 = vector.shape_cast %245 : vector<1x4x324xf32> to vector<4x324xf32>
    %247 = vector.broadcast %225 : vector<4x1xf32> to vector<4x324xf32>
    %248 = arith.mulf %246, %247 : vector<4x324xf32>
    %249 = vector.broadcast %230 : vector<4x1xf32> to vector<4x324xf32>
    %250 = arith.addf %248, %249 : vector<4x324xf32>
    %251 = arith.addf %250, %244 : vector<4x324xf32>
    %c1_266 = arith.constant 1 : index
    %c0_267 = arith.constant 0 : index
    %c0_268 = arith.constant 0 : index
    %252 = vector.load %arg8[%c1_266, %c0_267, %c0_268] : memref<2x4x324xf32, #tpu.memory_space<vmem>>, vector<1x4x324xf32>
    %253 = vector.shape_cast %252 : vector<1x4x324xf32> to vector<4x324xf32>
    %254 = vector.shape_cast %251 : vector<4x324xf32> to vector<1x4x324xf32>
    tpu.vector_store %arg8[%c1_266, %c0_267, %c0_268], %254 {strides = array<i32>} : memref<2x4x324xf32, #tpu.memory_space<vmem>>, vector<1x4x324xf32>,
    return
  }
}

</mosaic_0001>

<bundles_post_ra>
// kernel: residual_block.1
= control target key start
LH: loop header
LB: loop body
LE: loop exit
PB: predicated region body
PF: predicated region fallthrough
CT: control target
= control target key end

     0   :  { %s1687_s11 = smov 127   ;;  %s1688_s14 = smov 126   ;;  %vm78_vm0 = vcmask 556036   ;;  %vm51_vm1 = vcmask 551936   ;;  %vm70_vm2 = vcmask 1039360   ;;  %vm96_vm3 = vcmask 1031168   ;;  %s2351_s0 = inlined_call_operand.vmem [shape: f32[2,4,362], index: 0, kind: input, shape index: {}]   ;;  %s2352_s1 = inlined_call_operand.vmem [shape: bf16[4,36], index: 1, kind: input, shape index: {}]   ;;  %s2353_s7 = inlined_call_operand.vmem [shape: f32[1,1,324], index: 7, kind: input, shape index: {}]   ;;  %s2354_s8 = inlined_call_operand.vmem [shape: f32[2,4,324], index: 8, kind: output, shape index: {}]   ;;  %s2355_s3 = inlined_call_operand.vmem [shape: f32[1,4,1], index: 3, kind: input, shape index: {}]   ;;  %s2356_s4 = inlined_call_operand.vmem [shape: f32[1,4,1], index: 4, kind: input, shape index: {}]   ;;  %s2357_s2 = inlined_call_operand.vmem [shape: bf16[4,36], index: 2, kind: input, shape index: {}]   ;;  %s2358_s5 = inlined_call_operand.vmem [shape: f32[1,4,1], index: 5, kind: input, shape index: {}]   ;;  %s2359_s6 = inlined_call_operand.vmem [shape: f32[1,4,1], index: 6, kind: input, shape index: {}]  }
   0x1   :  { %v1747_v0 = vld [vmem:[%s2351_s0] sm:$0xff]  ;;  %v37_v1 = vld [vmem:[%s2351_s0 + $0x8] sm:$0xf]  ;;  %s1689_s17 = smov 110   ;;  %s1690_s22 = smov 109   ;;  %v1809_v34 = vld [vmem:[%s2351_s0 + $0xc] sm:$0xff] }
   0x2   :  { %40 = vst [vmem:[#allocation1] ss:$2 sm:$0xff] %v1747_v0  ;;  %v54_v2 = vld [vmem:[%s2351_s0 + $0x8] sm:$0xf]  ;;  %s1691_s25 = smov 108   ;;  %s1692_s28 = smov 92  }
   0x3   :  { %42 = vst [vmem:[#allocation1 + $0x10] ss:$2 sm:$0xff] %v37_v1  ;;  %v81_v8 = vld [vmem:[%s2351_s0 + $0x8] sm:$0xf]  ;;  %s1693_s9 = smov 91   ;;  %s1694_s16 = smov 90  }
   0x4   :  { %v106_v12 = vld [vmem:[%s2351_s0 + $0x8] sm:$0xf]  ;;  %v1631_v37 = vld [vmem:[%s2351_s0 + $0x14] sm:$0xf]  ;;  %vm122_vm4 = vcmask 900096   ;;  %vm173_vm5 = vcmask 883712  }
   0x5   :  { %v132_v16 = vld [vmem:[%s2351_s0 + $0x8] sm:$0xf]  ;;  %v1633_v41 = vld [vmem:[%s2351_s0 + $0x14] sm:$0xf]  ;;  %vm147_vm6 = vcmask 891904   ;;  %vm198_vm7 = vcmask 752640  }
   0x6   :  { %v157_v20 = vld [vmem:[%s2351_s0 + $0x8] sm:$0xf]  ;;  %v1635_v45 = vld [vmem:[%s2351_s0 + $0x14] sm:$0xf]  ;;  %vm224_vm8 = vcmask 744448   ;;  %vm249_vm9 = vcmask 736256  }
   0x7   :  { %v183_v24 = vld [vmem:[%s2351_s0 + $0x8] sm:$0xf]  ;;  %v1637_v49 = vld [vmem:[%s2351_s0 + $0x14] sm:$0xf]  ;;  %vm287_vm10 = vcmask 1041408   ;;  %vm2361_vm11 = vcmask 293888  }
   0x8   :  { %v208_v28 = vld [vmem:[%s2351_s0 + $0x8] sm:$0xf]  ;;  %v1639_v53 = vld [vmem:[%s2351_s0 + $0x14] sm:$0xf]  ;;  %vm2360_vm12 = vcmask 1043456   ;;  %s1698_s26 = smov 19  }
   0x9   :  { %v43_v3 = vld.sshfl [vmem:[#allocation1] sm:$0xff pattern:$0x75316420]  ;;  %v44_v4 = vld.sshfl [vmem:[#allocation1 + $0x8] sm:$0xff pattern:$0x75316420] }
   0xa   :  { %58 = vst [vmem:[#allocation1 + $0x1] ss:$2 sm:$0xff] %v1747_v0  ;;  %v1757_v5 = vld.sshfl [vmem:[#allocation1 + $0x10] sm:$0xff pattern:$0x75316420] }
   0xb   :  { %49 = vst [vmem:[#allocation2] sm:$0xf] %v43_v3  ;;  %v234_v32 = vld [vmem:[%s2351_s0 + $0x8] sm:$0xf]  ;;  %v1641_v58 = vld [vmem:[%s2351_s0 + $0x14] sm:$0xf] }
   0xc   :  { %50 = vst [vmem:[#allocation2 + $0x8] sm:$0xf] %v44_v4  ;;  %v1643_v63 = vld [vmem:[%s2351_s0 + $0x14] sm:$0xf] }
   0xd   :  { %60 = vst [vmem:[#allocation1 + $0x11] ss:$2 sm:$0xff] %v54_v2 }
   0xe   :  { %52 = vst.msk [vmem:[#allocation2 + $0x10] sm:$0xf] %vm51_vm1, %v1757_v5 }
  0x11   :  { %v62_v6 = vld.sshfl [vmem:[#allocation1 + $0x8] sm:$0xff pattern:$0x75316420]  ;;  %v61_v7 = vld.sshfl [vmem:[#allocation1] sm:$0xff pattern:$0x75316420] }
  0x12   :  { %66 = vrot.lane.b32.xlu0 %v62_v6, %s1687_s11  ;;  %84 = vst [vmem:[#allocation1] ss:$2 sm:$0xff] %v1747_v0  ;;  %64 = vrot.lane.b32.xlu2 %v61_v7, %s1687_s11 }
  0x14   :  { %v63_v9 = vld.sshfl [vmem:[#allocation1 + $0x10] sm:$0xff pattern:$0x75316420] }
  0x15   :  { %86 = vst [vmem:[#allocation1 + $0x10] ss:$2 sm:$0xff] %v81_v8  ;;  %v1645_v8 = vld [vmem:[%s2351_s0 + $0x14] sm:$0xf] }
  0x19   :  { %v87_v10 = vld.sshfl [vmem:[#allocation1] sm:$0xff pattern:$0x75316420]  ;;  %v88_v11 = vld.sshfl [vmem:[#allocation1 + $0x8] sm:$0xff pattern:$0x75316420] }
  0x1a   :  { %90 = vrot.lane.b32.xlu1 %v87_v10, %s1688_s14  ;;  %110 = vst [vmem:[#allocation1 + $0x1] ss:$2 sm:$0xff] %v1747_v0  ;;  %68 = vrot.lane.b32.xlu2 %v63_v9, %s1687_s11 }
  0x1c   :  { %v89_v13 = vld.sshfl [vmem:[#allocation1 + $0x10] sm:$0xff pattern:$0x75316420] }
  0x1d   :  { %94 = vrot.lane.b32.xlu0 %v89_v13, %s1688_s14  ;;  %112 = vst [vmem:[#allocation1 + $0x11] ss:$2 sm:$0xff] %v106_v12  ;;  %v1647_v13 = vld [vmem:[%s2351_s0 + $0x14] sm:$0xf] }
  0x21   :  { %v114_v14 = vld.sshfl [vmem:[#allocation1 + $0x8] sm:$0xff pattern:$0x75316420]  ;;  %v113_v15 = vld.sshfl [vmem:[#allocation1] sm:$0xff pattern:$0x75316420] }
  0x22   :  { %118 = vrot.lane.b32.xlu1 %v114_v14, %s1689_s17  ;;  %135 = vst [vmem:[#allocation1] ss:$2 sm:$0xff] %v1747_v0  ;;  %92 = vrot.lane.b32.xlu2 %v88_v11, %s1688_s14 }
  0x24   :  { %v115_v17 = vld.sshfl [vmem:[#allocation1 + $0x10] sm:$0xff pattern:$0x75316420] }
  0x25   :  { %116 = vrot.lane.b32.xlu0 %v113_v15, %s1689_s17  ;;  %137 = vst [vmem:[#allocation1 + $0x10] ss:$2 sm:$0xff] %v132_v16 }
  0x29   :  { %v138_v18 = vld.sshfl [vmem:[#allocation1] sm:$0xff pattern:$0x75316420]  ;;  %v139_v19 = vld.sshfl [vmem:[#allocation1 + $0x8] sm:$0xff pattern:$0x75316420] }
  0x2a   :  { %120 = vrot.lane.b32.xlu1 %v115_v17, %s1689_s17  ;;  %161 = vst [vmem:[#allocation1 + $0x1] ss:$2 sm:$0xff] %v1747_v0 }
  0x2c   :  { %v140_v21 = vld.sshfl [vmem:[#allocation1 + $0x10] sm:$0xff pattern:$0x75316420] }
  0x2d   :  { %163 = vst [vmem:[#allocation1 + $0x11] ss:$2 sm:$0xff] %v157_v20  ;;  %145 = vrot.lane.b32.xlu2 %v140_v21, %s1690_s22 }
  0x31   :  { %v164_v22 = vld.sshfl [vmem:[#allocation1] sm:$0xff pattern:$0x75316420]  ;;  %v165_v23 = vld.sshfl [vmem:[#allocation1 + $0x8] sm:$0xff pattern:$0x75316420] }
  0x32   :  { %141 = vrot.lane.b32.xlu1 %v138_v18, %s1690_s22  ;;  %186 = vst [vmem:[#allocation1] ss:$2 sm:$0xff] %v1747_v0 }
  0x34   :  { %v166_v25 = vld.sshfl [vmem:[#allocation1 + $0x10] sm:$0xff pattern:$0x75316420] }
  0x35   :  { %171 = vrot.lane.b32.xlu0 %v166_v25, %s1691_s25  ;;  %167 = vrot.lane.b32.xlu2 %v164_v22, %s1691_s25  ;;  %188 = vst [vmem:[#allocation1 + $0x10] ss:$2 sm:$0xff] %v183_v24 }
  0x39   :  { %v189_v26 = vld.sshfl [vmem:[#allocation1] sm:$0xff pattern:$0x75316420]  ;;  %v190_v27 = vld.sshfl [vmem:[#allocation1 + $0x8] sm:$0xff pattern:$0x75316420] }
  0x3a   :  { %143 = vrot.lane.b32.xlu1 %v139_v19, %s1690_s22  ;;  %212 = vst [vmem:[#allocation1 + $0x1] ss:$2 sm:$0xff] %v1747_v0 }
  0x3c   :  { %v191_v29 = vld.sshfl [vmem:[#allocation1 + $0x10] sm:$0xff pattern:$0x75316420] }
  0x3d   :  { %192 = vrot.lane.b32.xlu0 %v189_v26, %s1692_s28  ;;  %169 = vrot.lane.b32.xlu2 %v165_v23, %s1691_s25  ;;  %214 = vst [vmem:[#allocation1 + $0x11] ss:$2 sm:$0xff] %v208_v28 }
  0x41   :  { %v216_v30 = vld.sshfl [vmem:[#allocation1 + $0x8] sm:$0xff pattern:$0x75316420]  ;;  %v215_v31 = vld.sshfl [vmem:[#allocation1] sm:$0xff pattern:$0x75316420] }
  0x42   :  { %194 = vrot.lane.b32.xlu1 %v190_v27, %s1692_s28  ;;  %237 = vst [vmem:[#allocation1] ss:$2 sm:$0xff] %v1747_v0 }
  0x44   :  { %v217_v33 = vld.sshfl [vmem:[#allocation1 + $0x10] sm:$0xff pattern:$0x75316420] }
  0x45   :  { %220 = vrot.lane.b32.xlu0 %v216_v30, %s1693_s9  ;;  %239 = vst [vmem:[#allocation1 + $0x10] ss:$2 sm:$0xff] %v234_v32  ;;  %218 = vrot.lane.b32.xlu2 %v215_v31, %s1693_s9 }
  0x49   :  { %v240_v35 = vld.sshfl [vmem:[#allocation1] sm:$0xff pattern:$0x75316420]  ;;  %v241_v36 = vld.sshfl [vmem:[#allocation1 + $0x8] sm:$0xff pattern:$0x75316420] }
  0x4a   :  { %196 = vrot.lane.b32.xlu1 %v191_v29, %s1692_s28  ;;  %349 = vst [vmem:[#allocation1] ss:$2 sm:$0xff] %v1809_v34 }
  0x4c   :  { %v242_v38 = vld.sshfl [vmem:[#allocation1 + $0x10] sm:$0xff pattern:$0x75316420] }
  0x4d   :  { %243 = vrot.lane.b32.xlu0 %v240_v35, %s1694_s16  ;;  %222 = vrot.lane.b32.xlu2 %v217_v33, %s1693_s9  ;;  %351 = vst [vmem:[#allocation1 + $0x10] ss:$2 sm:$0xff] %v1631_v37 }
  0x51   :  { %v1818_v39 = vld.sshfl [vmem:[#allocation1] sm:$0xff pattern:$0x75316420]  ;;  %v1820_v40 = vld.sshfl [vmem:[#allocation1 + $0x8] sm:$0xff pattern:$0x75316420] }
  0x52   :  { %247 = vrot.lane.b32.xlu1 %v242_v38, %s1694_s16  ;;  %366 = vst [vmem:[#allocation1 + $0x1] ss:$2 sm:$0xff] %v1809_v34 }
  0x54   :  { %v1827_v42 = vld.sshfl [vmem:[#allocation1 + $0x10] sm:$0xff pattern:$0x75316420] }
  0x55   :  { %245 = vrot.lane.b32.xlu0 %v241_v36, %s1694_s16  ;;  %368 = vst [vmem:[#allocation1 + $0x11] ss:$2 sm:$0xff] %v1633_v41 }
  0x59   :  { %v370_v43 = vld.sshfl [vmem:[#allocation1 + $0x8] sm:$0xff pattern:$0x75316420]  ;;  %v369_v44 = vld.sshfl [vmem:[#allocation1] sm:$0xff pattern:$0x75316420] }
  0x5a   :  { %390 = vst [vmem:[#allocation1] ss:$2 sm:$0xff] %v1809_v34  ;;  %372 = vrot.lane.b32.xlu2 %v369_v44, %s1687_s11 }
  0x5c   :  { %v1835_v46 = vld.sshfl [vmem:[#allocation1 + $0x10] sm:$0xff pattern:$0x75316420] }
  0x5d   :  { %374 = vrot.lane.b32.xlu0 %v370_v43, %s1687_s11  ;;  %392 = vst [vmem:[#allocation1 + $0x10] ss:$2 sm:$0xff] %v1635_v45 }
  0x61   :  { %v393_v47 = vld.sshfl [vmem:[#allocation1] sm:$0xff pattern:$0x75316420]  ;;  %v394_v48 = vld.sshfl [vmem:[#allocation1 + $0x8] sm:$0xff pattern:$0x75316420] }
  0x62   :  { %396 = vrot.lane.b32.xlu1 %v393_v47, %s1688_s14  ;;  %415 = vst [vmem:[#allocation1 + $0x1] ss:$2 sm:$0xff] %v1809_v34  ;;  %398 = vrot.lane.b32.xlu2 %v394_v48, %s1688_s14 }
  0x64   :  { %v1844_v50 = vld.sshfl [vmem:[#allocation1 + $0x10] sm:$0xff pattern:$0x75316420] }
  0x65   :  { %417 = vst [vmem:[#allocation1 + $0x11] ss:$2 sm:$0xff] %v1637_v49 }
  0x69   :  { %v419_v51 = vld.sshfl [vmem:[#allocation1 + $0x8] sm:$0xff pattern:$0x75316420]  ;;  %v418_v52 = vld.sshfl [vmem:[#allocation1] sm:$0xff pattern:$0x75316420] }
  0x6a   :  { %423 = vrot.lane.b32.xlu1 %v419_v51, %s1689_s17  ;;  %421 = vrot.lane.b32.xlu0 %v418_v52, %s1689_s17  ;;  %439 = vst [vmem:[#allocation1] ss:$2 sm:$0xff] %v1809_v34 }
  0x6c   :  { %v1852_v54 = vld.sshfl [vmem:[#allocation1 + $0x10] sm:$0xff pattern:$0x75316420]  ;;  %v65_v55 = vpop.permute.xlu2 %64 }
  0x6d   :  { %441 = vst [vmem:[#allocation1 + $0x10] ss:$2 sm:$0xff] %v1639_v53 }
  0x71   :  { %v442_v56 = vld.sshfl [vmem:[#allocation1] sm:$0xff pattern:$0x75316420]  ;;  %v443_v57 = vld.sshfl [vmem:[#allocation1 + $0x8] sm:$0xff pattern:$0x75316420] }
  0x72   :  { %445 = vrot.lane.b32.xlu0 %v442_v56, %s1690_s22  ;;  %447 = vrot.lane.b32.xlu1 %v443_v57, %s1690_s22  ;;  %464 = vst [vmem:[#allocation1 + $0x1] ss:$2 sm:$0xff] %v1809_v34 }
  0x74   :  { %v444_v59 = vld.sshfl [vmem:[#allocation1 + $0x10] sm:$0xff pattern:$0x75316420]  ;;  %v69_v60 = vpop.permute.xlu2 %68 }
  0x75   :  { %449 = vrot.lane.b32.xlu2 %v444_v59, %s1690_s22  ;;  %79 = vst.msk [vmem:[#allocation2 + $0x10] sm:$0xf0] %vm78_vm0, %v69_v60 }
  0x76   :  { %466 = vst [vmem:[#allocation1 + $0x11] ss:$2 sm:$0xff] %v1641_v58 }
  0x79   :  { %v468_v61 = vld.sshfl [vmem:[#allocation1 + $0x8] sm:$0xff pattern:$0x75316420]  ;;  %v467_v62 = vld.sshfl [vmem:[#allocation1] sm:$0xff pattern:$0x75316420] }
  0x7a   :  { %472 = vrot.lane.b32.xlu0 %v468_v61, %s1691_s25  ;;  %488 = vst [vmem:[#allocation1] ss:$2 sm:$0xff] %v1809_v34 }
  0x7c   :  { %v93_v1 = vpop.permute.xlu2 %92  ;;  %v1896_v23 = vld [vmem:[#allocation2 + $0x10] sm:$0xff] }
  0x7d   :  { %470 = vrot.lane.b32.xlu2 %v467_v62, %s1691_s25  ;;  %v469_v0 = vld.sshfl [vmem:[#allocation1 + $0x10] sm:$0xff pattern:$0x75316420]  ;;  %360 = vst.msk [vmem:[#allocation2 + $0x10] sm:$0xf] %vm51_vm1, %v1827_v42 }
  0x7e   :  { %490 = vst [vmem:[#allocation1 + $0x10] ss:$2 sm:$0xff] %v1643_v63 }
  0x81   :  { %v491_v2 = vld.sshfl [vmem:[#allocation1] sm:$0xff pattern:$0x75316420]  ;;  %v492_v3 = vld.sshfl [vmem:[#allocation1 + $0x8] sm:$0xff pattern:$0x75316420] }
  0x82   :  { %494 = vrot.lane.b32.xlu1 %v491_v2, %s1692_s28  ;;  %513 = vst [vmem:[#allocation1 + $0x1] ss:$2 sm:$0xff] %v1809_v34 }
  0x84   :  { %v67_v4 = vpop.permute.xlu0 %66 }
  0x85   :  { %496 = vrot.lane.b32.xlu2 %v492_v3, %s1692_s28  ;;  %v71_v6 = vsel %vm70_vm2, %v65_v55, %v67_v4  ;;  %v72_v7 = vsel %vm70_vm2, %v67_v4, %v69_v60  ;;  %v493_v5 = vld.sshfl [vmem:[#allocation1 + $0x10] sm:$0xff pattern:$0x75316420] }
  0x86   :  { %76 = vst [vmem:[#allocation2] sm:$0xf0] %v71_v6 }
  0x87   :  { %77 = vst [vmem:[#allocation2 + $0x8] sm:$0xf0] %v72_v7  ;;  %v1878_v9 = vpop.permute.xlu2 %145 }
  0x88   :  { %515 = vst [vmem:[#allocation1 + $0x11] ss:$2 sm:$0xff] %v1645_v8 }
  0x89   :  { %v517_v10 = vld.sshfl [vmem:[#allocation1 + $0x8] sm:$0xff pattern:$0x75316420]  ;;  %v516_v11 = vld.sshfl [vmem:[#allocation1] sm:$0xff pattern:$0x75316420] }
  0x8a   :  { %521 = vrot.lane.b32.xlu1 %v517_v10, %s1693_s9  ;;  %519 = vrot.lane.b32.xlu0 %v516_v11, %s1693_s9  ;;  %537 = vst [vmem:[#allocation1] ss:$2 sm:$0xff] %v1809_v34 }
  0x8b   :  { %155 = vst.msk [vmem:[#allocation2 + $0x40] sm:$0xf] %vm51_vm1, %v1878_v9 }
  0x8c   :  { %v91_v12 = vpop.permute.xlu1 %90 }
  0x8d   :  { %v97_v14 = vsel %vm96_vm3, %v91_v12, %v93_v1  ;;  %v1893_v21 = vld [vmem:[#allocation2] sm:$0xff] }
  0x8e   :  { %102 = vst [vmem:[#allocation2 + $0x18] sm:$0xf] %v97_v14  ;;  %v1900_v24 = vld [vmem:[#allocation2 + $0x8] sm:$0xff] }
  0x8f   :  { %v518_v15 = vld.sshfl [vmem:[#allocation1 + $0x10] sm:$0xff pattern:$0x75316420]  ;;  %v95_v16 = vpop.permute.xlu0 %94  ;;  %v168_v17 = vpop.permute.xlu2 %167  ;;  %358 = vst [vmem:[#allocation2] sm:$0xf] %v1818_v39 }
  0x90   :  { %539 = vst [vmem:[#allocation1 + $0x10] ss:$2 sm:$0xff] %v1647_v13  ;;  %v98_v18 = vsel %vm96_vm3, %v93_v1, %v95_v16 }
  0x91   :  { %v541_v19 = vld.sshfl [vmem:[#allocation1 + $0x8] sm:$0xff pattern:$0x75316420]  ;;  %v540_v20 = vld.sshfl [vmem:[#allocation1] sm:$0xff pattern:$0x75316420] }
  0x92   :  { %545 = vrot.lane.b32.xlu1 %v541_v19, %s1694_s16  ;;  %543 = vrot.lane.b32.xlu0 %v540_v20, %s1694_s16  ;;  %104 = vst.msk [vmem:[#allocation2 + $0x28] sm:$0xf] %vm51_vm1, %v95_v16 }
  0x93   :  { %103 = vst [vmem:[#allocation2 + $0x20] sm:$0xf] %v98_v18 }
  0x94   :  { %v119_v22 = vpop.permute.xlu1 %118  ;;  %359 = vst [vmem:[#allocation2 + $0x8] sm:$0xf] %v1820_v40 }
  0x97   :  { %v542_v25 = vld.sshfl [vmem:[#allocation1 + $0x10] sm:$0xff pattern:$0x75316420]  ;;  %v117_v26 = vpop.permute.xlu0 %116  ;;  %v170_v27 = vpop.permute.xlu2 %169 }
  0x98   :  { %547 = vrot.lane.b32.xlu2 %v542_v25, %s1694_s16  ;;  %v123_v28 = vsel %vm122_vm4, %v117_v26, %v119_v22  ;;  %v174_v29 = vsel %vm173_vm5, %v168_v17, %v170_v27 }
  0x99   :  { %128 = vst [vmem:[#allocation2 + $0x18] sm:$0xf0] %v123_v28 }
  0x9a   :  { %498 = vrot.lane.b32.xlu1 %v493_v5, %s1692_s28  ;;  %474 = vrot.lane.b32.xlu0 %v469_v0, %s1691_s25  ;;  %179 = vst [vmem:[#allocation2 + $0x30] sm:$0xf0] %v174_v29 }
  0x9c   :  { %v121_v30 = vpop.permute.xlu1 %120 }
  0x9d   :  { %v124_v31 = vsel %vm122_vm4, %v119_v22, %v121_v30  ;;  %130 = vst.msk [vmem:[#allocation2 + $0x28] sm:$0xf0] %vm78_vm0, %v121_v30 }
  0x9e   :  { %129 = vst [vmem:[#allocation2 + $0x20] sm:$0xf0] %v124_v31 }
  0x9f   :  { %v219_v32 = vpop.permute.xlu2 %218 }
  0xa0   :  { %523 = vrot.lane.b32.xlu2 %v518_v15, %s1693_s9  ;;  %v262_v11 = vld [vmem:[#allocation2 + $0x18] sm:$0xff] }
  0xa1   :  { %v274_v18 = vpack.c.bf16 %v262_v11, %v1893_v21  ;;  %v258_v21 = vld [vmem:[%s2352_s1] sm:$0x3] }
  0xa2   :  { %400 = vrot.lane.b32.xlu1 %v1844_v50, %s1688_s14  ;;  %376 = vrot.lane.b32.xlu0 %v1835_v46, %s1687_s11 }
  0xa4   :  { %v142_v33 = vpop.permute.xlu1 %141  ;;  %v264_v5 = vld [vmem:[#allocation2 + $0x28] sm:$0xff] }
  0xa5   :  { %v276_v15 = vpack.c.bf16 %v264_v5, %v1896_v23  ;;  %v263_v17 = vld [vmem:[#allocation2 + $0x20] sm:$0xff] }
  0xa6   :  { %v275_v19 = vpack.c.bf16 %v263_v17, %v1900_v24 }
  0xa7   :  { %v172_v34 = vpop.permute.xlu0 %171  ;;  %v223_v35 = vpop.permute.xlu2 %222 }
  0xa8   :  { %425 = vrot.lane.b32.xlu2 %v1852_v54, %s1689_s17  ;;  %181 = vst.msk [vmem:[#allocation2 + $0x40] sm:$0xf0] %vm78_vm0, %v172_v34  ;;  %v175_v36 = vsel %vm173_vm5, %v170_v27, %v172_v34 }
  0xa9   :  { %180 = vst [vmem:[#allocation2 + $0x38] sm:$0xf0] %v175_v36 }
  0xaa   :  { %232 = vst.msk [vmem:[#allocation2 + $0x58] sm:$0xf0] %vm78_vm0, %v223_v35 }
  0xac   :  { %v144_v37 = vpop.permute.xlu1 %143 }
  0xad   :  { %v148_v38 = vsel %vm147_vm6, %v142_v33, %v144_v37  ;;  %v149_v39 = vsel %vm147_vm6, %v144_v37, %v1878_v9 }
  0xae   :  { %153 = vst [vmem:[#allocation2 + $0x30] sm:$0xf] %v148_v38 }
  0xaf   :  { %154 = vst [vmem:[#allocation2 + $0x38] sm:$0xf] %v149_v39  ;;  %v193_v40 = vpop.permute.xlu0 %192  ;;  %v267_v58 = vld [vmem:[#allocation2 + $0x40] sm:$0xff] }
  0xb4   :  { %v195_v41 = vpop.permute.xlu1 %194  ;;  %v373_v46 = vpop.permute.xlu2 %372 }
  0xb5   :  { %v199_v42 = vsel %vm198_vm7, %v193_v40, %v195_v41  ;;  %v265_v6 = vld [vmem:[#allocation2 + $0x30] sm:$0xff] }
  0xb6   :  { %204 = vst [vmem:[#allocation2 + $0x48] sm:$0xf] %v199_v42  ;;  %v266_v14 = vld [vmem:[#allocation2 + $0x38] sm:$0xff] }
  0xb7   :  { %v221_v43 = vpop.permute.xlu0 %220 }
  0xb8   :  { %v225_v44 = vsel %vm224_vm8, %v219_v32, %v221_v43  ;;  %v226_v45 = vsel %vm224_vm8, %v221_v43, %v223_v35 }
  0xb9   :  { %230 = vst [vmem:[#allocation2 + $0x48] sm:$0xf0] %v225_v44 }
  0xba   :  { %231 = vst [vmem:[#allocation2 + $0x50] sm:$0xf0] %v226_v45 }
  0xbc   :  { %v197_v47 = vpop.permute.xlu1 %196  ;;  %v1929_v51 = vpop.permute.xlu2 %398 }
  0xbd   :  { %v200_v48 = vsel %vm198_vm7, %v195_v41, %v197_v47  ;;  %206 = vst.msk [vmem:[#allocation2 + $0x58] sm:$0xf] %vm51_vm1, %v197_v47 }
  0xbe   :  { %205 = vst [vmem:[#allocation2 + $0x50] sm:$0xf] %v200_v48 }
  0xbf   :  { %v244_v49 = vpop.permute.xlu0 %243 }
  0xc0   :  { %v268_v7 = vld [vmem:[#allocation2 + $0x48] sm:$0xff] }
  0xc1   :  { %v277_v13 = vpack.c.bf16 %v268_v7, %v265_v6 }
  0xc4   :  { %v248_v50 = vpop.permute.xlu1 %247  ;;  %v270_v59 = vld [vmem:[#allocation2 + $0x58] sm:$0xff] }
  0xc5   :  { %257 = vst.msk [vmem:[#allocation2 + $0x70] sm:$0xf] %vm51_vm1, %v248_v50  ;;  %v279_v3 = vpack.c.bf16 %v270_v59, %v267_v58  ;;  %v269_v10 = vld [vmem:[#allocation2 + $0x50] sm:$0xff] }
  0xc6   :  { %v278_v16 = vpack.c.bf16 %v269_v10, %v266_v14 }
  0xc7   :  { %v246_v52 = vpop.permute.xlu0 %245 }
  0xc8   :  { %v250_v53 = vsel %vm249_vm9, %v244_v49, %v246_v52  ;;  %v251_v54 = vsel %vm249_vm9, %v246_v52, %v248_v50 }
  0xc9   :  { %255 = vst [vmem:[#allocation2 + $0x60] sm:$0xf] %v250_v53 }
  0xca   :  { %256 = vst [vmem:[#allocation2 + $0x68] sm:$0xf] %v251_v54 }
  0xcc   :  { %v273_v55 = vld [vmem:[#allocation2 + $0x70] sm:$0xf] }
  0xcd   :  { %v282_v56 = vpack.c.bf16 %v273_v55, %v273_v55 }
  0xcf   :  { %v295_v57 = vsel %vm287_vm10, %v282_v56, 0  ;;  %v1934_v60 = vpop.permute.xlu0 %374  ;;  %v450_v61 = vpop.permute.xlu2 %449 }
  0xd0   :  { %328 = vmatpush.bf16.msra.mxu2 %v295_v57  ;;  %v271_v62 = vld [vmem:[#allocation2 + $0x60] sm:$0xf]  ;;  %v378_v63 = vsel %vm70_vm2, %v373_v46, %v1934_v60  ;;  %458 = vst.msk [vmem:[#allocation2 + $0x40] sm:$0xf] %vm51_vm1, %v450_v61 }
  0xd1   :  { %v280_v0 = vpack.c.bf16 %v271_v62, %v271_v62  ;;  %v272_v1 = vld [vmem:[#allocation2 + $0x68] sm:$0xf]  ;;  %383 = vst [vmem:[#allocation2] sm:$0xf0] %v378_v63 }
  0xd2   :  { %v281_v2 = vpack.c.bf16 %v272_v1, %v272_v1 }
  0xd3   :  { %v289_v4 = vsel %vm287_vm10, %v280_v0, 0 }
  0xd4   :  { %302 = vmatpush.bf16.msra.mxu0 %v289_v4  ;;  %v292_v8 = vsel %vm287_vm10, %v281_v2, 0  ;;  %329 = vmatpush.bf16.msra.mxu2 %v279_v3  ;;  %v397_v9 = vpop.permute.xlu1 %396 }
  0xd5   :  { %315 = vmatpush.bf16.msra.mxu1 %v292_v8  ;;  %v402_v12 = vsel %vm96_vm3, %v397_v9, %v1929_v51 }
  0xd6   :  { %407 = vst [vmem:[#allocation2 + $0x18] sm:$0xf] %v402_v12 }
  0xd7   :  { %v471_v26 = vpop.permute.xlu2 %470 }
  0xd8   :  { %303 = vmatpush.bf16.msra.mxu0 %v277_v13  ;;  %330 = vmatpush.bf16.msra.mxu2 %v276_v15  ;;  %v558_v2 = vld [vmem:[#allocation2] sm:$0xff] }
  0xd9   :  { %316 = vmatpush.bf16.msra.mxu1 %v278_v16 }
  0xdb   :  { %1629 = vmatmul.msk.bf16.vlgmr.msra.gmra.mxu2 %vm2361_vm11, %v258_v21 }
  0xdc   :  { %304 = vmatpush.bf16.msra.mxu0 %v274_v18  ;;  %v424_v20 = vpop.permute.xlu1 %423  ;;  %v422_v22 = vpop.permute.xlu0 %421  ;;  %v30_v18 = vld [vmem:[%s2353_s7] sm:$0x7] }
  0xdd   :  { %317 = vmatpush.bf16.msra.mxu1 %v275_v19  ;;  %v427_v25 = vsel %vm122_vm4, %v422_v22, %v424_v20  ;;  %v647_v19 = vperm.slane %v30_v18, 1 }
  0xde   :  { %432 = vst [vmem:[#allocation2 + $0x18] sm:$0xf0] %v427_v25 }
  0xdf   :  { %v497_v24 = vpop.permute.xlu2 %496  ;;  %1627 = vmatmul.msk.bf16.vlgmr.msra.gmra.mxu0 %vm2361_vm11, %v258_v21  ;;  %v650_v22 = vrot.slane %v647_v19, 4 }
  0xe0   :  { %1628 = vmatmul.msk.bf16.vlgmr.msra.gmra.mxu1 %vm2361_vm11, %v258_v21 }
  0xe4   :  { %v446_v27 = vpop.permute.xlu0 %445  ;;  %v448_v28 = vpop.permute.xlu1 %447 }
  0xe5   :  { %v451_v23 = vsel %vm147_vm6, %v446_v27, %v448_v28  ;;  %v452_v29 = vsel %vm147_vm6, %v448_v28, %v450_v61  ;;  %v561_v5 = vld [vmem:[#allocation2 + $0x18] sm:$0xff] }
  0xe6   :  { %456 = vst [vmem:[#allocation2 + $0x30] sm:$0xf] %v451_v23  ;;  %v573_v12 = vpack.c.bf16 %v561_v5, %v558_v2 }
  0xe7   :  { %457 = vst [vmem:[#allocation2 + $0x38] sm:$0xf] %v452_v29 }
  0xec   :  { %v473_v30 = vpop.permute.xlu0 %472 }
  0xed   :  { %v476_v31 = vsel %vm173_vm5, %v471_v26, %v473_v30 }
  0xee   :  { %481 = vst [vmem:[#allocation2 + $0x30] sm:$0xf0] %v476_v31  ;;  %v1999_v31 = vperm.slane %v30_v18, 2 }
  0xf2   :  { %v548_v32 = vpop.permute.xlu2 %547 }
  0xf3   :  { %556 = vst.msk [vmem:[#allocation2 + $0x70] sm:$0xf] %vm51_vm1, %v548_v32 }
  0xf4   :  { %v495_v33 = vpop.permute.xlu1 %494 }
  0xf5   :  { %v500_v34 = vsel %vm198_vm7, %v495_v33, %v497_v24  ;;  %v564_v62 = vld [vmem:[#allocation2 + $0x30] sm:$0xff] }
  0xf6   :  { %505 = vst [vmem:[#allocation2 + $0x48] sm:$0xf] %v500_v34 }
  0xfa   :  { %v524_v35 = vpop.permute.xlu2 %523  ;;  %v572_v36 = vld [vmem:[#allocation2 + $0x70] sm:$0xf] }
  0xfb   :  { %532 = vst.msk [vmem:[#allocation2 + $0x58] sm:$0xf0] %vm78_vm0, %v524_v35  ;;  %v581_v37 = vpack.c.bf16 %v572_v36, %v572_v36 }
  0xfc   :  { %v522_v38 = vpop.permute.xlu1 %521  ;;  %v520_v39 = vpop.permute.xlu0 %519 }
  0xfd   :  { %v526_v40 = vsel %vm224_vm8, %v522_v38, %v524_v35  ;;  %v525_v41 = vsel %vm224_vm8, %v520_v39, %v522_v38  ;;  %v592_v42 = vsel %vm287_vm10, %v581_v37, 0 }
  0xfe   :  { %531 = vst [vmem:[#allocation2 + $0x50] sm:$0xf0] %v526_v40  ;;  %625 = vmatpush.bf16.msrb.mxu1 %v592_v42 }
  0xff   :  { %530 = vst [vmem:[#allocation2 + $0x48] sm:$0xf0] %v525_v41 }
 0x102   :  { %v426_v43 = vpop.permute.xlu2 %425 }
 0x103   :  { %v428_v44 = vsel %vm122_vm4, %v424_v20, %v426_v43  ;;  %434 = vst.msk [vmem:[#allocation2 + $0x28] sm:$0xf0] %vm78_vm0, %v426_v43  ;;  %v646_v20 = vperm.slane %v30_v18, 0 }
 0x104   :  { %433 = vst [vmem:[#allocation2 + $0x20] sm:$0xf0] %v428_v44  ;;  %v546_v45 = vpop.permute.xlu1 %545  ;;  %v544_v46 = vpop.permute.xlu0 %543 }
 0x105   :  { %v550_v47 = vsel %vm249_vm9, %v546_v45, %v548_v32  ;;  %v549_v48 = vsel %vm249_vm9, %v544_v46, %v546_v45  ;;  %v1988_v28 = vsel %vm2360_vm12, %v646_v20, %v650_v22 }
 0x106   :  { %555 = vst [vmem:[#allocation2 + $0x68] sm:$0xf] %v550_v47  ;;  %v567_v61 = vld [vmem:[#allocation2 + $0x48] sm:$0xff] }
 0x107   :  { %554 = vst [vmem:[#allocation2 + $0x60] sm:$0xf] %v549_v48  ;;  %v576_v1 = vpack.c.bf16 %v567_v61, %v564_v62 }
 0x10c   :  { %v499_v49 = vpop.permute.xlu1 %498  ;;  %v475_v50 = vpop.permute.xlu0 %474 }
 0x10d   :  { %v501_v52 = vsel %vm198_vm7, %v497_v24, %v499_v49  ;;  %507 = vst.msk [vmem:[#allocation2 + $0x58] sm:$0xf] %vm51_vm1, %v499_v49  ;;  %v477_v53 = vsel %vm173_vm5, %v473_v30, %v475_v50  ;;  %v571_v54 = vld [vmem:[#allocation2 + $0x68] sm:$0xf] }
 0x10e   :  { %506 = vst [vmem:[#allocation2 + $0x50] sm:$0xf] %v501_v52  ;;  %v570_v55 = vld [vmem:[#allocation2 + $0x60] sm:$0xf]  ;;  %v580_v56 = vpack.c.bf16 %v571_v54, %v571_v54 }
 0x10f   :  { %482 = vst [vmem:[#allocation2 + $0x38] sm:$0xf0] %v477_v53  ;;  %v579_v57 = vpack.c.bf16 %v570_v55, %v570_v55 }
 0x110   :  { %483 = vst.msk [vmem:[#allocation2 + $0x40] sm:$0xf0] %vm78_vm0, %v475_v50  ;;  %v589_v58 = vsel %vm287_vm10, %v580_v56, 0 }
 0x111   :  { %v586_v59 = vsel %vm287_vm10, %v579_v57, 0  ;;  %612 = vmatpush.bf16.msrb.mxu0 %v589_v58 }
 0x112   :  { %599 = vmatpush.bf16.msra.mxu3 %v586_v59 }
 0x114   :  { %v401_v63 = vpop.permute.xlu1 %400  ;;  %v377_v0 = vpop.permute.xlu0 %376  ;;  %v569_v6 = vld [vmem:[#allocation2 + $0x58] sm:$0xff] }
 0x115   :  { %v403_v3 = vsel %vm96_vm3, %v1929_v51, %v401_v63  ;;  %409 = vst.msk [vmem:[#allocation2 + $0x28] sm:$0xf] %vm51_vm1, %v401_v63  ;;  %v379_v4 = vsel %vm70_vm2, %v1934_v60, %v377_v0  ;;  %v568_v7 = vld [vmem:[#allocation2 + $0x50] sm:$0xff]  ;;  %v557_v51 = vld [vmem:[%s2352_s1] sm:$0x3] }
 0x116   :  { %408 = vst [vmem:[#allocation2 + $0x20] sm:$0xf] %v403_v3  ;;  %600 = vmatpush.bf16.msra.mxu3 %v576_v1  ;;  %v565_v8 = vld [vmem:[#allocation2 + $0x38] sm:$0xff]  ;;  %v1695_v1 = vmov 839922192  }
 0x117   :  { %384 = vst [vmem:[#allocation2 + $0x8] sm:$0xf0] %v379_v4  ;;  %v566_v9 = vld [vmem:[#allocation2 + $0x40] sm:$0xff]  ;;  %v577_v10 = vpack.c.bf16 %v568_v7, %v565_v8  ;;  %v700_v2 = vunpack.c.l.s4 %v1695_v1 }
 0x118   :  { %385 = vst.msk [vmem:[#allocation2 + $0x10] sm:$0xf0] %vm78_vm0, %v377_v0  ;;  %v578_v11 = vpack.c.bf16 %v569_v6, %v566_v9 }
 0x119   :  { %613 = vmatpush.bf16.msrb.mxu0 %v577_v10  ;;  %v2026_v7 = vunpack.c.0.s8 %v700_v2 }
 0x11a   :  { %626 = vmatpush.bf16.msrb.mxu1 %v578_v11  ;;  %601 = vmatpush.bf16.msra.mxu3 %v573_v12 }
 0x11c   :  { %v563_v60 = vld [vmem:[#allocation2 + $0x28] sm:$0xff] }
 0x11d   :  { %1648 = vmatmul.msk.bf16.vlgmr.msra.gmra.mxu3 %vm2361_vm11, %v557_v51  ;;  %v562_v13 = vld [vmem:[#allocation2 + $0x20] sm:$0xff] }
 0x11e   :  { %v559_v14 = vld [vmem:[#allocation2 + $0x8] sm:$0xff] }
 0x11f   :  { %v560_v15 = vld [vmem:[#allocation2 + $0x10] sm:$0xff]  ;;  %v574_v16 = vpack.c.bf16 %v562_v13, %v559_v14 }
 0x120   :  { %v575_v17 = vpack.c.bf16 %v563_v60, %v560_v15 }
 0x121   :  { %614 = vmatpush.bf16.msrb.mxu0 %v574_v16 }
 0x122   :  { %627 = vmatpush.bf16.msrb.mxu1 %v575_v17 }
 0x124   :  { %1649 = vmatmul.msk.bf16.vlgmr.msrb.gmra.mxu0 %vm2361_vm11, %v557_v51 }
 0x125   :  { %1650 = vmatmul.msk.bf16.vlgmr.msrb.gmra.mxu1 %vm2361_vm11, %v557_v51 }
 0x15c   :  { %v306_v25 = vpop.f32.mrf.mxu0 }
 0x15d   :  { %v319_v26 = vpop.f32.mrf.mxu1 }
 0x15e   :  { %v338_v27 = vrot.slane %v319_v26, 4  ;;  %v332_v21 = vpop.f32.mrf.mxu2 }
 0x15f   :  { %343 = vst.msk [vmem:[%s2354_s8 + $0x8] sm:$0xf] %vm51_vm1, %v332_v21 }
 0x160   :  { %v1991_v23 = vsel %vm2360_vm12, %v306_v25, %v338_v27 }
 0x161   :  { %v653_v29 = vmul.f32 %v1988_v28, %v1991_v23 }
 0x163   :  { %661 = vst [vmem:[#allocation1] ss:$2 sm:$0xff] %v653_v29 }
 0x164   :  { %v308_v24 = vpop.f32.mrf.mxu0 }
 0x165   :  { %v321_v30 = vpop.f32.mrf.mxu1 }
 0x166   :  { %v642_v32 = vld [vmem:[%s2354_s8 + $0x8] sm:$0xf]  ;;  %v334_v33 = vpop.f32.mrf.mxu2 }
 0x167   :  { %v654_v34 = vmul.f32 %v1999_v31, %v642_v32  ;;  %v774_v2 = vld [vmem:[%s2354_s8 + $0x8] sm:$0xf] }
 0x169   :  { %663 = vst [vmem:[#allocation1 + $0x10] ss:$2 sm:$0xff] %v654_v34 }
 0x16a   :  { %v664_v35 = vld.sshfl [vmem:[#allocation1] sm:$0xff pattern:$0x75316420]  ;;  %v665_v36 = vld.sshfl [vmem:[#allocation1 + $0x8] sm:$0xff pattern:$0x75316420] }
 0x16b   :  { %v680_v37 = vsel %vm2360_vm12, %v664_v35, 0.0  ;;  %v681_v38 = vsel %vm2360_vm12, %v665_v36, 0.0 }
 0x16c   :  { %v682_v40 = vadd.f32 %v681_v38, %v680_v37 }
 0x170   :  { %v666_v39 = vld.sshfl [vmem:[#allocation1 + $0x10] sm:$0xff pattern:$0x75316420] }
 0x171   :  { %v683_v41 = vsel %vm51_vm1, %v666_v39, 0.0  ;;  %v1696_v39 = vmov 0  }
 0x172   :  { %v684_v42 = vadd.f32 %v683_v41, %v682_v40  ;;  %1681 = vset.pattern.permute.xlu0 %v1696_v39  ;;  %1682 = vset.pattern.permute.xlu1 %v1696_v39 }
 0x174   :  { %685 = vadd.xlane.f32.xlu0 %v684_v42 }
 0x1a0   :  { %v603_v43 = vpop.f32.mrf.mxu3 }
 0x1a1   :  { %v616_v44 = vpop.f32.mrf.mxu0 }
 0x1a2   :  { %v629_v45 = vpop.f32.mrf.mxu1  ;;  %v635_v46 = vrot.slane %v616_v44, 4 }
 0x1a3   :  { %1652 = vst.msk [vmem:[%s2354_s8 + $0x14] sm:$0xf] %vm51_vm1, %v629_v45 }
 0x1a4   :  { %v2013_v47 = vsel %vm2360_vm12, %v603_v43, %v635_v46 }
 0x1a5   :  { %v655_v48 = vmul.f32 %v1988_v28, %v2013_v47 }
 0x1a7   :  { %668 = vst [vmem:[#allocation1 + $0x20] ss:$2 sm:$0xff] %v655_v48 }
 0x1a8   :  { %v605_v49 = vpop.f32.mrf.mxu3 }
 0x1a9   :  { %v618_v50 = vpop.f32.mrf.mxu0 }
 0x1aa   :  { %v644_v52 = vld [vmem:[%s2354_s8 + $0x14] sm:$0xf]  ;;  %v631_v53 = vpop.f32.mrf.mxu1 }
 0x1ab   :  { %v656_v54 = vmul.f32 %v1999_v31, %v644_v52 }
 0x1ad   :  { %670 = vst [vmem:[#allocation1 + $0x30] ss:$2 sm:$0xff] %v656_v54  ;;  %v757_v54 = vld [vmem:[%s2355_s3] sm:$0xf] }
 0x1ae   :  { %v671_v55 = vld.sshfl [vmem:[#allocation1 + $0x20] sm:$0xff pattern:$0x75316420]  ;;  %v672_v56 = vld.sshfl [vmem:[#allocation1 + $0x28] sm:$0xff pattern:$0x75316420] }
 0x1af   :  { %v687_v57 = vsel %vm2360_vm12, %v671_v55, 0.0  ;;  %v688_v58 = vsel %vm2360_vm12, %v672_v56, 0.0 }
 0x1b0   :  { %v689_v59 = vadd.f32 %v688_v58, %v687_v57  ;;  %v770_v58 = vld [vmem:[%s2356_s4] sm:$0xf] }
 0x1b4   :  { %v673_v61 = vld.sshfl [vmem:[#allocation1 + $0x30] sm:$0xff pattern:$0x75316420] }
 0x1b5   :  { %v690_v62 = vsel %vm51_vm1, %v673_v61, 0.0 }
 0x1b6   :  { %v691_v63 = vadd.f32 %v690_v62, %v689_v59  ;;  %v1697_v62 = vmov 0.0  }
 0x1b7   :  { %31 = vst [vmem:[#allocation3] sm:$0xff] %v1697_v62 }
 0x1b8   :  { %692 = vadd.xlane.f32.xlu1 %v691_v63  ;;  %34 = vst [vmem:[#allocation3 + $0xc] sm:$0xff] %v1697_v62 }
 0x1e7   :  { %v686_v0 = vpop.xlane.xlu0 %685 }
 0x1e8   :  { %v694_v4 = vsel %vm2360_vm12, %v686_v0, 0.0 }
 0x22b   :  { %v693_v3 = vpop.xlane.xlu1 %692 }
 0x22c   :  { %v695_v6 = vsel %vm2360_vm12, %v693_v3, 0.0 }
 0x22d   :  { %v696_v5 = vadd.f32 %v695_v6, %v694_v4 }
 0x22f   :  { %v2028_v8 = vmul.f32 0.001953125, %v696_v5 }
 0x231   :  { %v702_v9 = vperm.slane %v2028_v8, %v2026_v7 }
 0x233   :  { %v704_v10 = vsub.f32 %v1991_v23, %v702_v9  ;;  %v705_v11 = vsub.f32 %v642_v32, %v702_v9  ;;  %v706_v12 = vsub.f32 %v2013_v47, %v702_v9  ;;  %v707_v51 = vsub.f32 %v644_v52, %v702_v9  ;;  %v1654_v9 = vld [vmem:[%s2354_s8 + $0x14] sm:$0xf] }
 0x235   :  { %v708_v60 = vmul.f32 %v704_v10, %v1988_v28  ;;  %v709_v13 = vmul.f32 %v705_v11, %v1999_v31  ;;  %v710_v14 = vmul.f32 %v706_v12, %v1988_v28  ;;  %v711_v15 = vmul.f32 %v707_v51, %v1999_v31 }
 0x237   :  { %v712_v16 = vmul.f32 %v708_v60, %v708_v60  ;;  %v714_v17 = vmul.f32 %v710_v14, %v710_v14  ;;  %v715_v18 = vmul.f32 %v711_v15, %v711_v15  ;;  %v713_v19 = vmul.f32 %v709_v13, %v709_v13 }
 0x239   :  { %727 = vst [vmem:[#allocation1 + $0x20] ss:$2 sm:$0xff] %v714_v17 }
 0x23a   :  { %729 = vst [vmem:[#allocation1 + $0x30] ss:$2 sm:$0xff] %v715_v18 }
 0x23b   :  { %720 = vst [vmem:[#allocation1] ss:$2 sm:$0xff] %v712_v16 }
 0x23c   :  { %722 = vst [vmem:[#allocation1 + $0x10] ss:$2 sm:$0xff] %v713_v19 }
 0x240   :  { %v730_v21 = vld.sshfl [vmem:[#allocation1 + $0x20] sm:$0xff pattern:$0x75316420]  ;;  %v731_v24 = vld.sshfl [vmem:[#allocation1 + $0x28] sm:$0xff pattern:$0x75316420] }
 0x241   :  { %v746_v33 = vsel %vm2360_vm12, %v730_v21, 0.0  ;;  %v747_v34 = vsel %vm2360_vm12, %v731_v24, 0.0  ;;  %v732_v35 = vld.sshfl [vmem:[#allocation1 + $0x30] sm:$0xff pattern:$0x75316420] }
 0x242   :  { %v723_v20 = vld.sshfl [vmem:[#allocation1] sm:$0xff pattern:$0x75316420]  ;;  %v724_v22 = vld.sshfl [vmem:[#allocation1 + $0x8] sm:$0xff pattern:$0x75316420]  ;;  %v748_v36 = vadd.f32 %v747_v34, %v746_v33 }
 0x243   :  { %v725_v25 = vld.sshfl [vmem:[#allocation1 + $0x10] sm:$0xff pattern:$0x75316420]  ;;  %v739_v26 = vsel %vm2360_vm12, %v723_v20, 0.0  ;;  %v740_v27 = vsel %vm2360_vm12, %v724_v22, 0.0  ;;  %v749_v37 = vsel %vm51_vm1, %v732_v35, 0.0 }
 0x244   :  { %v741_v29 = vadd.f32 %v740_v27, %v739_v26  ;;  %v742_v30 = vsel %vm51_vm1, %v725_v25, 0.0  ;;  %v750_v38 = vadd.f32 %v749_v37, %v748_v36 }
 0x246   :  { %v743_v32 = vadd.f32 %v742_v30, %v741_v29 }
 0x248   :  { %744 = vadd.xlane.f32.xlu2 %v743_v32 }
 0x250   :  { %751 = vadd.xlane.f32.xlu2 %v750_v38 }
 0x2bb   :  { %v745_v40 = vpop.xlane.xlu2 %744 }
 0x2bc   :  { %v753_v42 = vsel %vm2360_vm12, %v745_v40, 0.0 }
 0x2c3   :  { %v752_v41 = vpop.xlane.xlu2 %751 }
 0x2c4   :  { %v754_v43 = vsel %vm2360_vm12, %v752_v41, 0.0  ;;  %vm808_vm12 = vcmask 154624  }
 0x2c5   :  { %v755_v44 = vadd.f32 %v754_v43, %v753_v42 }
 0x2c7   :  { %v756_v45 = vmul.f32 0.001953125, %v755_v44 }
 0x2c9   :  { %v758_v46 = vadd.f32 1e-05, %v756_v45 }
 0x2cb   :  { %1683 = vrsqrt.f32 %v758_v46  ;;  %vm765_vm14 = vweird.f32 %v758_v46 }
 0x2d1   :  { %v1684_v48 = vpop.eup %1683 }
 0x2d2   :  { %v760_v49 = vmul.f32 %v1684_v48, %v758_v46  ;;  %vm766_vm13 = vweird.f32 %v1684_v48 }
 0x2d3   :  { %vm767_vm15 = vmor %vm765_vm14, %vm766_vm13  ;;  %vm32_vm13 = vcmask 863232   ;;  %vm813_vm14 = vcmask 1043608  }
 0x2d4   :  { %v761_v50 = vmul.f32 %v1684_v48, %v760_v49  ;;  %33 = vst.msk [vmem:[#allocation3 + $0x8] sm:$0xf] %vm32_vm13, %v1697_v62 }
 0x2d5   :  { %35 = vst.msk [vmem:[#allocation3 + $0x14] sm:$0xf] %vm32_vm13, %v1697_v62  ;;  %vm817_vm13 = vcmask 707584  }
 0x2d6   :  { %v762_v52 = vmul.f32 0.5, %v761_v50 }
 0x2d8   :  { %v763_v53 = vsub.f32 1.5, %v762_v52 }
 0x2da   :  { %v764_v55 = vmul.f32 %v1684_v48, %v763_v53 }
 0x2dc   :  { %v768_v56 = vsel %vm767_vm15, %v1684_v48, %v764_v55  ;;  %vm814_vm15 = vcmask 1047556  }
 0x2dd   :  { %v769_v57 = vmul.f32 %v768_v56, %v757_v54  ;;  %vm815_vm11 = vmor %vm814_vm15, %vm813_vm14 }
 0x2df   :  { %777 = vperm.xlu0 %1681, %v769_v57   ;;  %v771_v59 = vmul.f32 %v769_v57, %v2028_v8 }
 0x2e1   :  { %v772_v61 = vsub.f32 %v770_v58, %v771_v59 }
 0x2e3   :  { %788 = vperm.xlu1 %1682, %v772_v61  }
 0x351   :  { %v778_v63 = vpop.permute.xlu0 %777 }
 0x352   :  { %v782_v0 = vperm.slane %v778_v63, %v2026_v7 }
 0x354   :  { %v785_v4 = vmul.f32 %v782_v0, %v774_v2  ;;  %v784_v6 = vmul.f32 %v782_v0, %v1991_v23  ;;  %v822_v12 = vmul.f32 %v1654_v9, %v782_v0  ;;  %v821_v51 = vmul.f32 %v782_v0, %v2013_v47 }
 0x355   :  { %v789_v1 = vpop.permute.xlu1 %788 }
 0x356   :  { %v793_v3 = vperm.slane %v789_v1, %v2026_v7 }
 0x358   :  { %v796_v5 = vadd.f32 %v793_v3, %v785_v4  ;;  %v795_v8 = vadd.f32 %v793_v3, %v784_v6  ;;  %v824_v14 = vadd.f32 %v822_v12, %v793_v3  ;;  %v823_v15 = vadd.f32 %v821_v51, %v793_v3 }
 0x35a   :  { %v798_v10 = vmax.f32 %v796_v5, 0.0  ;;  %v797_v11 = vmax.f32 %v795_v8, 0.0  ;;  %v826_v23 = vmax.f32 %v824_v14, 0.0  ;;  %v825_v16 = vmax.f32 %v823_v15, 0.0 }
 0x35c   :  { %v800_v60 = vmul.f32 %v798_v10, %v1999_v31  ;;  %v799_v13 = vmul.f32 %v797_v11, %v1988_v28  ;;  %v828_v17 = vmul.f32 %v826_v23, %v1999_v31  ;;  %v827_v18 = vmul.f32 %v825_v16, %v1988_v28 }
 0x35e   :  { %805 = vrot.lane.b32.xlu1 %v800_v60, %s1698_s26  ;;  %803 = vrot.lane.b32.xlu2 %v799_v13, %s1698_s26 }
 0x366   :  { %833 = vrot.lane.b32.xlu1 %v828_v17, %s1698_s26  ;;  %831 = vrot.lane.b32.xlu2 %v827_v18, %s1698_s26 }
 0x3b8   :  { %v804_v47 = vpop.permute.xlu2 %803 }
 0x3b9   :  { %v807_v19 = vrot.slane %v804_v47, 4 }
 0x3bb   :  { %v809_v20 = vsel %vm808_vm12, %v807_v19, %v804_v47 }
 0x3bc   :  { %816 = vst.msk [vmem:[#allocation3] sm:$0xff] %vm815_vm11, %v809_v20 }
 0x3c0   :  { %v832_v22 = vpop.permute.xlu2 %831 }
 0x3c1   :  { %v835_v25 = vrot.slane %v832_v22, 4 }
 0x3c3   :  { %v843_v26 = vld [vmem:[#allocation3] sm:$0xff]  ;;  %v836_v27 = vsel %vm808_vm12, %v835_v25, %v832_v22 }
 0x3c4   :  { %847 = vst [vmem:[#allocation1] ss:$2 sm:$0xff] %v843_v26 }
 0x3c5   :  { %841 = vst.msk [vmem:[#allocation3 + $0xc] sm:$0xff] %vm815_vm11, %v836_v27  ;;  %vm2362_vm11 = vcmask 293888  }
 0x3c6   :  { %vm2364_vm14 = vmmov %vm2362_vm11 }
 0x3cb   :  { %v850_v29 = vld.sshfl [vmem:[#allocation1] sm:$0xff pattern:$0x75316420]  ;;  %v851_v21 = vld.sshfl [vmem:[#allocation1 + $0x8] sm:$0xff pattern:$0x75316420] }
 0x3cc   :  { %864 = vst [vmem:[#allocation1 + $0x1] ss:$2 sm:$0xff] %v843_v26  ;;  %v2086_v62 = vld [vmem:[#allocation3 + $0xc] sm:$0xff] }
 0x3cd   :  { %856 = vst [vmem:[#allocation2] sm:$0xf] %v850_v29 }
 0x3ce   :  { %857 = vst [vmem:[#allocation2 + $0x8] sm:$0xf] %v851_v21 }
 0x3d0   :  { %v806_v24 = vpop.permute.xlu1 %805 }
 0x3d1   :  { %v810_v30 = vsel %vm808_vm12, %v807_v19, %v806_v24 }
 0x3d2   :  { %818 = vst.msk [vmem:[#allocation3 + $0x8] sm:$0xf] %vm817_vm13, %v810_v30 }
 0x3d3   :  { %v867_v32 = vld.sshfl [vmem:[#allocation1] sm:$0xff pattern:$0x75316420]  ;;  %v868_v33 = vld.sshfl [vmem:[#allocation1 + $0x8] sm:$0xff pattern:$0x75316420] }
 0x3d4   :  { %888 = vst [vmem:[#allocation1] ss:$2 sm:$0xff] %v843_v26  ;;  %872 = vrot.lane.b32.xlu2 %v868_v33, %s1687_s11  ;;  %870 = vrot.lane.b32.xlu1 %v867_v32, %s1687_s11 }
 0x3d8   :  { %v834_v34 = vpop.permute.xlu1 %833 }
 0x3d9   :  { %v844_v35 = vld [vmem:[#allocation3 + $0x8] sm:$0xf]  ;;  %v837_v38 = vsel %vm808_vm12, %v835_v25, %v834_v34  ;;  %vm2363_vm12 = vmmov %vm2362_vm11 }
 0x3da   :  { %849 = vst [vmem:[#allocation1 + $0x10] ss:$2 sm:$0xff] %v844_v35  ;;  %v860_v42 = vld [vmem:[#allocation3 + $0x8] sm:$0xf] }
 0x3db   :  { %v891_v36 = vld.sshfl [vmem:[#allocation1] sm:$0xff pattern:$0x75316420]  ;;  %v892_v37 = vld.sshfl [vmem:[#allocation1 + $0x8] sm:$0xff pattern:$0x75316420] }
 0x3dc   :  { %913 = vst [vmem:[#allocation1 + $0x1] ss:$2 sm:$0xff] %v843_v26  ;;  %896 = vrot.lane.b32.xlu1 %v892_v37, %s1688_s14  ;;  %894 = vrot.lane.b32.xlu0 %v891_v36, %s1688_s14  ;;  %v885_v45 = vld [vmem:[#allocation3 + $0x8] sm:$0xf] }
 0x3dd   :  { %842 = vst.msk [vmem:[#allocation3 + $0x14] sm:$0xf] %vm817_vm13, %v837_v38  ;;  %v909_v50 = vld [vmem:[#allocation3 + $0x8] sm:$0xf] }
 0x3de   :  { %v934_v55 = vld [vmem:[#allocation3 + $0x8] sm:$0xf] }
 0x3df   :  { %v958_v59 = vld [vmem:[#allocation3 + $0x8] sm:$0xf] }
 0x3e0   :  { %v983_v1 = vld [vmem:[#allocation3 + $0x8] sm:$0xf] }
 0x3e1   :  { %v852_v41 = vld.sshfl [vmem:[#allocation1 + $0x10] sm:$0xff pattern:$0x75316420]  ;;  %v1007_v6 = vld [vmem:[#allocation3 + $0x8] sm:$0xf] }
 0x3e2   :  { %866 = vst [vmem:[#allocation1 + $0x11] ss:$2 sm:$0xff] %v860_v42  ;;  %v1032_v10 = vld [vmem:[#allocation3 + $0x8] sm:$0xf] }
 0x3e3   :  { %v916_v39 = vld.sshfl [vmem:[#allocation1] sm:$0xff pattern:$0x75316420]  ;;  %v917_v40 = vld.sshfl [vmem:[#allocation1 + $0x8] sm:$0xff pattern:$0x75316420] }
 0x3e4   :  { %937 = vst [vmem:[#allocation1] ss:$2 sm:$0xff] %v843_v26  ;;  %v1139_v60 = vld [vmem:[#allocation3 + $0x14] sm:$0xf] }
 0x3e5   :  { %858 = vst.msk [vmem:[#allocation2 + $0x10] sm:$0xf] %vm51_vm1, %v852_v41  ;;  %v1155_v23 = vld [vmem:[#allocation3 + $0x14] sm:$0xf] }
 0x3e6   :  { %v1180_v47 = vld [vmem:[#allocation3 + $0x14] sm:$0xf] }
 0x3e7   :  { %v1204_v25 = vld [vmem:[#allocation3 + $0x14] sm:$0xf] }
 0x3e8   :  { %v1229_v33 = vld [vmem:[#allocation3 + $0x14] sm:$0xf] }
 0x3e9   :  { %v869_v46 = vld.sshfl [vmem:[#allocation1 + $0x10] sm:$0xff pattern:$0x75316420] }
 0x3ea   :  { %874 = vrot.lane.b32.xlu2 %v869_v46, %s1687_s11  ;;  %890 = vst [vmem:[#allocation1 + $0x10] ss:$2 sm:$0xff] %v885_v45  ;;  %v1278_v46 = vld [vmem:[#allocation3 + $0x14] sm:$0xf] }
 0x3eb   :  { %v940_v43 = vld.sshfl [vmem:[#allocation1] sm:$0xff pattern:$0x75316420]  ;;  %v941_v44 = vld.sshfl [vmem:[#allocation1 + $0x8] sm:$0xff pattern:$0x75316420] }
 0x3ec   :  { %962 = vst [vmem:[#allocation1 + $0x1] ss:$2 sm:$0xff] %v843_v26 }
 0x3f1   :  { %v893_v52 = vld.sshfl [vmem:[#allocation1 + $0x10] sm:$0xff pattern:$0x75316420] }
 0x3f2   :  { %898 = vrot.lane.b32.xlu0 %v893_v52, %s1688_s14  ;;  %915 = vst [vmem:[#allocation1 + $0x11] ss:$2 sm:$0xff] %v909_v50  ;;  %919 = vrot.lane.b32.xlu2 %v916_v39, %s1689_s17  ;;  %v1302_v50 = vld [vmem:[#allocation3 + $0x14] sm:$0xf] }
 0x3f3   :  { %v965_v48 = vld.sshfl [vmem:[#allocation1] sm:$0xff pattern:$0x75316420]  ;;  %v966_v49 = vld.sshfl [vmem:[#allocation1 + $0x8] sm:$0xff pattern:$0x75316420] }
 0x3f4   :  { %986 = vst [vmem:[#allocation1] ss:$2 sm:$0xff] %v843_v26 }
 0x3f9   :  { %v918_v56 = vld.sshfl [vmem:[#allocation1 + $0x10] sm:$0xff pattern:$0x75316420] }
 0x3fa   :  { %923 = vrot.lane.b32.xlu1 %v918_v56, %s1689_s17  ;;  %939 = vst [vmem:[#allocation1 + $0x10] ss:$2 sm:$0xff] %v934_v55  ;;  %921 = vrot.lane.b32.xlu0 %v917_v40, %s1689_s17  ;;  %v1253_v40 = vld [vmem:[#allocation3 + $0x14] sm:$0xf] }
 0x3fb   :  { %v989_v53 = vld.sshfl [vmem:[#allocation1] sm:$0xff pattern:$0x75316420]  ;;  %v990_v54 = vld.sshfl [vmem:[#allocation1 + $0x8] sm:$0xff pattern:$0x75316420]  ;;  %945 = vrot.lane.b32.xlu2 %v941_v44, %s1690_s22 }
 0x3fc   :  { %1011 = vst [vmem:[#allocation1 + $0x1] ss:$2 sm:$0xff] %v843_v26 }
 0x401   :  { %v942_v61 = vld.sshfl [vmem:[#allocation1 + $0x10] sm:$0xff pattern:$0x75316420] }
 0x402   :  { %943 = vrot.lane.b32.xlu1 %v940_v43, %s1690_s22  ;;  %968 = vrot.lane.b32.xlu0 %v965_v48, %s1691_s25  ;;  %964 = vst [vmem:[#allocation1 + $0x11] ss:$2 sm:$0xff] %v958_v59 }
 0x403   :  { %v1014_v57 = vld.sshfl [vmem:[#allocation1] sm:$0xff pattern:$0x75316420]  ;;  %v1015_v58 = vld.sshfl [vmem:[#allocation1 + $0x8] sm:$0xff pattern:$0x75316420] }
 0x404   :  { %1035 = vst [vmem:[#allocation1] ss:$2 sm:$0xff] %v843_v26 }
 0x409   :  { %v967_v2 = vld.sshfl [vmem:[#allocation1 + $0x10] sm:$0xff pattern:$0x75316420] }
 0x40a   :  { %972 = vrot.lane.b32.xlu2 %v967_v2, %s1691_s25  ;;  %988 = vst [vmem:[#allocation1 + $0x10] ss:$2 sm:$0xff] %v983_v1  ;;  %947 = vrot.lane.b32.xlu1 %v942_v61, %s1690_s22 }
 0x40b   :  { %v1038_v63 = vld.sshfl [vmem:[#allocation1] sm:$0xff pattern:$0x75316420]  ;;  %v1039_v0 = vld.sshfl [vmem:[#allocation1 + $0x8] sm:$0xff pattern:$0x75316420]  ;;  %994 = vrot.lane.b32.xlu0 %v990_v54, %s1692_s28 }
 0x40c   :  { %1142 = vst [vmem:[#allocation1] ss:$2 sm:$0xff] %v2086_v62  ;;  %v1327_v54 = vld [vmem:[#allocation3 + $0x14] sm:$0xf] }
 0x411   :  { %v991_v5 = vld.sshfl [vmem:[#allocation1 + $0x10] sm:$0xff pattern:$0x75316420] }
 0x412   :  { %970 = vrot.lane.b32.xlu1 %v966_v49, %s1691_s25  ;;  %1013 = vst [vmem:[#allocation1 + $0x11] ss:$2 sm:$0xff] %v1007_v6  ;;  %992 = vrot.lane.b32.xlu2 %v989_v53, %s1692_s28 }
 0x413   :  { %v2092_v3 = vld.sshfl [vmem:[#allocation1] sm:$0xff pattern:$0x75316420]  ;;  %v2094_v4 = vld.sshfl [vmem:[#allocation1 + $0x8] sm:$0xff pattern:$0x75316420]  ;;  %996 = vrot.lane.b32.xlu0 %v991_v5, %s1692_s28 }
 0x414   :  { %1159 = vst [vmem:[#allocation1 + $0x1] ss:$2 sm:$0xff] %v2086_v62 }
 0x419   :  { %v1016_v11 = vld.sshfl [vmem:[#allocation1 + $0x10] sm:$0xff pattern:$0x75316420] }
 0x41a   :  { %1019 = vrot.lane.b32.xlu2 %v1015_v58, %s1693_s9  ;;  %1017 = vrot.lane.b32.xlu1 %v1014_v57, %s1693_s9  ;;  %1037 = vst [vmem:[#allocation1 + $0x10] ss:$2 sm:$0xff] %v1032_v10 }
 0x41b   :  { %v2100_v8 = vld.sshfl [vmem:[#allocation1] sm:$0xff pattern:$0x75316420]  ;;  %v1163_v9 = vld.sshfl [vmem:[#allocation1 + $0x8] sm:$0xff pattern:$0x75316420]  ;;  %1043 = vrot.lane.b32.xlu0 %v1039_v0, %s1694_s16 }
 0x41c   :  { %1183 = vst [vmem:[#allocation1] ss:$2 sm:$0xff] %v2086_v62 }
 0x421   :  { %v1040_v13 = vld.sshfl [vmem:[#allocation1 + $0x10] sm:$0xff pattern:$0x75316420] }
 0x422   :  { %1021 = vrot.lane.b32.xlu1 %v1016_v11, %s1693_s9  ;;  %1144 = vst [vmem:[#allocation1 + $0x10] ss:$2 sm:$0xff] %v1139_v60  ;;  %1041 = vrot.lane.b32.xlu2 %v1038_v63, %s1694_s16 }
 0x423   :  { %v2106_v12 = vld.sshfl [vmem:[#allocation1] sm:$0xff pattern:$0x75316420]  ;;  %v1187_v51 = vld.sshfl [vmem:[#allocation1 + $0x8] sm:$0xff pattern:$0x75316420]  ;;  %1045 = vrot.lane.b32.xlu0 %v1040_v13, %s1694_s16 }
 0x424   :  { %1208 = vst [vmem:[#allocation1 + $0x1] ss:$2 sm:$0xff] %v2086_v62 }
 0x429   :  { %v1147_v16 = vld.sshfl [vmem:[#allocation1 + $0x10] sm:$0xff pattern:$0x75316420] }
 0x42a   :  { %1167 = vrot.lane.b32.xlu1 %v1163_v9, %s1687_s11  ;;  %1161 = vst [vmem:[#allocation1 + $0x11] ss:$2 sm:$0xff] %v1155_v23 }
 0x42b   :  { %v2112_v14 = vld.sshfl [vmem:[#allocation1] sm:$0xff pattern:$0x75316420]  ;;  %v2114_v15 = vld.sshfl [vmem:[#allocation1 + $0x8] sm:$0xff pattern:$0x75316420]  ;;  %1191 = vrot.lane.b32.xlu0 %v1187_v51, %s1688_s14 }
 0x42c   :  { %1232 = vst [vmem:[#allocation1] ss:$2 sm:$0xff] %v2086_v62 }
 0x42e   :  { %v873_v27 = vpop.permute.xlu2 %872 }
 0x431   :  { %v1164_v19 = vld.sshfl [vmem:[#allocation1 + $0x10] sm:$0xff pattern:$0x75316420] }
 0x432   :  { %1169 = vrot.lane.b32.xlu2 %v1164_v19, %s1687_s11  ;;  %1185 = vst [vmem:[#allocation1 + $0x10] ss:$2 sm:$0xff] %v1180_v47 }
 0x433   :  { %v2119_v17 = vld.sshfl [vmem:[#allocation1] sm:$0xff pattern:$0x75316420]  ;;  %v1236_v18 = vld.sshfl [vmem:[#allocation1 + $0x8] sm:$0xff pattern:$0x75316420] }
 0x434   :  { %1257 = vst [vmem:[#allocation1 + $0x1] ss:$2 sm:$0xff] %v2086_v62 }
 0x439   :  { %v1188_v26 = vld.sshfl [vmem:[#allocation1 + $0x10] sm:$0xff pattern:$0x75316420] }
 0x43a   :  { %1193 = vrot.lane.b32.xlu1 %v1188_v26, %s1688_s14  ;;  %1210 = vst [vmem:[#allocation1 + $0x11] ss:$2 sm:$0xff] %v1204_v25 }
 0x43b   :  { %v2123_v20 = vld.sshfl [vmem:[#allocation1] sm:$0xff pattern:$0x75316420]  ;;  %v1261_v22 = vld.sshfl [vmem:[#allocation1 + $0x8] sm:$0xff pattern:$0x75316420] }
 0x43c   :  { %1281 = vst [vmem:[#allocation1] ss:$2 sm:$0xff] %v2086_v62  ;;  %1265 = vrot.lane.b32.xlu0 %v1261_v22, %s1691_s25 }
 0x441   :  { %v1213_v32 = vld.sshfl [vmem:[#allocation1 + $0x10] sm:$0xff pattern:$0x75316420] }
 0x442   :  { %1240 = vrot.lane.b32.xlu1 %v1236_v18, %s1690_s22  ;;  %1234 = vst [vmem:[#allocation1 + $0x10] ss:$2 sm:$0xff] %v1229_v33 }
 0x443   :  { %v2128_v29 = vld.sshfl [vmem:[#allocation1] sm:$0xff pattern:$0x75316420]  ;;  %v1285_v21 = vld.sshfl [vmem:[#allocation1 + $0x8] sm:$0xff pattern:$0x75316420] }
 0x444   :  { %1306 = vst [vmem:[#allocation1 + $0x1] ss:$2 sm:$0xff] %v2086_v62  ;;  %v875_v34 = vpop.permute.xlu2 %874 }
 0x445   :  { %v877_v35 = vsel %vm70_vm2, %v873_v27, %v875_v34  ;;  %883 = vst.msk [vmem:[#allocation2 + $0x10] sm:$0xf0] %vm78_vm0, %v875_v34 }
 0x446   :  { %v871_v24 = vpop.permute.xlu1 %870  ;;  %882 = vst [vmem:[#allocation2 + $0x8] sm:$0xf0] %v877_v35 }
 0x447   :  { %v876_v30 = vsel %vm70_vm2, %v871_v24, %v873_v27 }
 0x448   :  { %881 = vst [vmem:[#allocation2] sm:$0xf0] %v876_v30 }
 0x449   :  { %v1237_v43 = vld.sshfl [vmem:[#allocation1 + $0x10] sm:$0xff pattern:$0x75316420] }
 0x44a   :  { %1242 = vrot.lane.b32.xlu2 %v1237_v43, %s1690_s22  ;;  %1259 = vst [vmem:[#allocation1 + $0x11] ss:$2 sm:$0xff] %v1253_v40 }
 0x44b   :  { %v1310_v36 = vld.sshfl [vmem:[#allocation1 + $0x8] sm:$0xff pattern:$0x75316420]  ;;  %v1309_v37 = vld.sshfl [vmem:[#allocation1] sm:$0xff pattern:$0x75316420] }
 0x44c   :  { %1330 = vst [vmem:[#allocation1] ss:$2 sm:$0xff] %v2086_v62  ;;  %v2141_v44 = vld [vmem:[#allocation2 + $0x10] sm:$0xff]  ;;  %v920_v48 = vpop.permute.xlu2 %919 }
 0x44d   :  { %1153 = vst.msk [vmem:[#allocation2 + $0x10] sm:$0xf] %vm51_vm1, %v1147_v16  ;;  %v2144_v45 = vld [vmem:[#allocation2 + $0x8] sm:$0xff] }
 0x44e   :  { %v897_v38 = vpop.permute.xlu1 %896  ;;  %v895_v39 = vpop.permute.xlu0 %894  ;;  %1152 = vst [vmem:[#allocation2 + $0x8] sm:$0xf] %v2094_v4 }
 0x44f   :  { %v900_v41 = vsel %vm96_vm3, %v895_v39, %v897_v38  ;;  %v2137_v42 = vld [vmem:[#allocation2] sm:$0xff] }
 0x450   :  { %905 = vst [vmem:[#allocation2 + $0x18] sm:$0xf] %v900_v41 }
 0x451   :  { %1151 = vst [vmem:[#allocation2] sm:$0xf] %v2092_v3  ;;  %v1262_v49 = vld.sshfl [vmem:[#allocation1 + $0x10] sm:$0xff pattern:$0x75316420] }
 0x452   :  { %1267 = vrot.lane.b32.xlu1 %v1262_v49, %s1691_s25  ;;  %1283 = vst [vmem:[#allocation1 + $0x10] ss:$2 sm:$0xff] %v1278_v46  ;;  %1289 = vrot.lane.b32.xlu2 %v1285_v21, %s1692_s28 }
 0x453   :  { %v1334_v61 = vld.sshfl [vmem:[#allocation1 + $0x8] sm:$0xff pattern:$0x75316420]  ;;  %v1333_v3 = vld.sshfl [vmem:[#allocation1] sm:$0xff pattern:$0x75316420] }
 0x455   :  { %v946_v53 = vpop.permute.xlu2 %945 }
 0x459   :  { %v1286_v52 = vld.sshfl [vmem:[#allocation1 + $0x10] sm:$0xff pattern:$0x75316420] }
 0x45a   :  { %1291 = vrot.lane.b32.xlu0 %v1286_v52, %s1692_s28  ;;  %1308 = vst [vmem:[#allocation1 + $0x11] ss:$2 sm:$0xff] %v1302_v50  ;;  %1314 = vrot.lane.b32.xlu1 %v1310_v36, %s1693_s9 }
 0x461   :  { %v1311_v55 = vld.sshfl [vmem:[#allocation1 + $0x10] sm:$0xff pattern:$0x75316420] }
 0x462   :  { %1218 = vrot.lane.b32.xlu0 %v1213_v32, %s1689_s17  ;;  %1316 = vrot.lane.b32.xlu2 %v1311_v55, %s1693_s9  ;;  %1332 = vst [vmem:[#allocation1 + $0x10] ss:$2 sm:$0xff] %v1327_v54 }
 0x463   :  { %1238 = vrot.lane.b32.xlu1 %v2119_v17, %s1690_s22 }
 0x464   :  { %v899_v56 = vpop.permute.xlu0 %898  ;;  %v973_v57 = vpop.permute.xlu2 %972 }
 0x465   :  { %v901_v58 = vsel %vm96_vm3, %v897_v38, %v899_v56  ;;  %907 = vst.msk [vmem:[#allocation2 + $0x28] sm:$0xf] %vm51_vm1, %v899_v56 }
 0x466   :  { %906 = vst [vmem:[#allocation2 + $0x20] sm:$0xf] %v901_v58 }
 0x467   :  { %981 = vst.msk [vmem:[#allocation2 + $0x40] sm:$0xf0] %vm78_vm0, %v973_v57 }
 0x469   :  { %v1335_v59 = vld.sshfl [vmem:[#allocation1 + $0x10] sm:$0xff pattern:$0x75316420] }
 0x46a   :  { %1340 = vrot.lane.b32.xlu0 %v1335_v59, %s1694_s16  ;;  %1338 = vrot.lane.b32.xlu2 %v1334_v61, %s1694_s16 }
 0x46b   :  { %1312 = vrot.lane.b32.xlu1 %v1309_v37, %s1693_s9 }
 0x46c   :  { %v924_v62 = vpop.permute.xlu1 %923  ;;  %v922_v63 = vpop.permute.xlu0 %921 }
 0x46d   :  { %932 = vst.msk [vmem:[#allocation2 + $0x28] sm:$0xf0] %vm78_vm0, %v924_v62  ;;  %v925_v0 = vsel %vm122_vm4, %v920_v48, %v922_v63  ;;  %v926_v1 = vsel %vm122_vm4, %v922_v63, %v924_v62  ;;  %v993_v2 = vpop.permute.xlu2 %992 }
 0x46e   :  { %930 = vst [vmem:[#allocation2 + $0x18] sm:$0xf0] %v925_v0 }
 0x46f   :  { %931 = vst [vmem:[#allocation2 + $0x20] sm:$0xf0] %v926_v1 }
 0x472   :  { %1216 = vrot.lane.b32.xlu2 %v2114_v15, %s1689_s17  ;;  %1336 = vrot.lane.b32.xlu0 %v1333_v3, %s1694_s16 }
 0x473   :  { %1214 = vrot.lane.b32.xlu1 %v2112_v14, %s1689_s17 }
 0x474   :  { %v944_v4 = vpop.permute.xlu1 %943  ;;  %v969_v6 = vpop.permute.xlu0 %968 }
 0x475   :  { %v949_v5 = vsel %vm147_vm6, %v944_v4, %v946_v53  ;;  %v1020_v9 = vpop.permute.xlu2 %1019  ;;  %v1059_v35 = vld [vmem:[#allocation2 + $0x18] sm:$0xff] }
 0x476   :  { %954 = vst [vmem:[#allocation2 + $0x30] sm:$0xf] %v949_v5  ;;  %v1071_v40 = vpack.c.bf16 %v1059_v35, %v2137_v42  ;;  %v1060_v56 = vld [vmem:[#allocation2 + $0x20] sm:$0xff]  ;;  %v1061_v42 = vld [vmem:[#allocation2 + $0x28] sm:$0xff] }
 0x477   :  { %v1073_v58 = vpack.c.bf16 %v1061_v42, %v2141_v44 }
 0x47a   :  { %1263 = vrot.lane.b32.xlu2 %v2123_v20, %s1691_s25  ;;  %1287 = vrot.lane.b32.xlu0 %v2128_v29, %s1692_s28 }
 0x47c   :  { %v948_v10 = vpop.permute.xlu1 %947 }
 0x47d   :  { %v950_v11 = vsel %vm147_vm6, %v946_v53, %v948_v10  ;;  %956 = vst.msk [vmem:[#allocation2 + $0x40] sm:$0xf] %vm51_vm1, %v948_v10  ;;  %v995_v51 = vpop.permute.xlu0 %994  ;;  %v1042_v13 = vpop.permute.xlu2 %1041  ;;  %v1055_v53 = vld [vmem:[%s2357_s2] sm:$0x3] }
 0x47e   :  { %955 = vst [vmem:[#allocation2 + $0x38] sm:$0xf] %v950_v11  ;;  %v998_v60 = vsel %vm198_vm7, %v993_v2, %v995_v51 }
 0x47f   :  { %1003 = vst [vmem:[#allocation2 + $0x48] sm:$0xf] %v998_v60 }
 0x482   :  { %1165 = vrot.lane.b32.xlu2 %v2100_v8, %s1687_s11  ;;  %1189 = vrot.lane.b32.xlu0 %v2106_v12, %s1688_s14 }
 0x484   :  { %v971_v14 = vpop.permute.xlu1 %970  ;;  %v1064_v50 = vld [vmem:[#allocation2 + $0x40] sm:$0xff] }
 0x485   :  { %v974_v15 = vsel %vm173_vm5, %v969_v6, %v971_v14  ;;  %v975_v23 = vsel %vm173_vm5, %v971_v14, %v973_v57  ;;  %v997_v16 = vpop.permute.xlu0 %996  ;;  %v1072_v57 = vpack.c.bf16 %v1060_v56, %v2144_v45 }
 0x486   :  { %979 = vst [vmem:[#allocation2 + $0x30] sm:$0xf0] %v974_v15  ;;  %v999_v17 = vsel %vm198_vm7, %v995_v51, %v997_v16 }
 0x487   :  { %980 = vst [vmem:[#allocation2 + $0x38] sm:$0xf0] %v975_v23 }
 0x488   :  { %1004 = vst [vmem:[#allocation2 + $0x50] sm:$0xf] %v999_v17 }
 0x489   :  { %1005 = vst.msk [vmem:[#allocation2 + $0x58] sm:$0xf] %vm51_vm1, %v997_v16 }
 0x48c   :  { %v1018_v18 = vpop.permute.xlu1 %1017  ;;  %v1170_v47 = vpop.permute.xlu2 %1169 }
 0x48d   :  { %v1023_v8 = vsel %vm224_vm8, %v1018_v18, %v1020_v9  ;;  %v1044_v19 = vpop.permute.xlu0 %1043  ;;  %1178 = vst.msk [vmem:[#allocation2 + $0x10] sm:$0xf0] %vm78_vm0, %v1170_v47  ;;  %v1062_v30 = vld [vmem:[#allocation2 + $0x30] sm:$0xff] }
 0x48e   :  { %1028 = vst [vmem:[#allocation2 + $0x48] sm:$0xf0] %v1023_v8  ;;  %v1047_v12 = vsel %vm249_vm9, %v1042_v13, %v1044_v19  ;;  %v1063_v49 = vld [vmem:[#allocation2 + $0x38] sm:$0xff] }
 0x48f   :  { %1052 = vst [vmem:[#allocation2 + $0x60] sm:$0xf] %v1047_v12 }
 0x494   :  { %v1022_v20 = vpop.permute.xlu1 %1021 }
 0x495   :  { %v1024_v22 = vsel %vm224_vm8, %v1020_v9, %v1022_v20  ;;  %1030 = vst.msk [vmem:[#allocation2 + $0x58] sm:$0xf0] %vm78_vm0, %v1022_v20  ;;  %v1046_v25 = vpop.permute.xlu0 %1045  ;;  %v1065_v24 = vld [vmem:[#allocation2 + $0x48] sm:$0xff] }
 0x496   :  { %1029 = vst [vmem:[#allocation2 + $0x50] sm:$0xf0] %v1024_v22  ;;  %v1048_v26 = vsel %vm249_vm9, %v1044_v19, %v1046_v25  ;;  %v1068_v27 = vld [vmem:[#allocation2 + $0x60] sm:$0xf]  ;;  %v1074_v33 = vpack.c.bf16 %v1065_v24, %v1062_v30 }
 0x497   :  { %1053 = vst [vmem:[#allocation2 + $0x68] sm:$0xf] %v1048_v26  ;;  %v1077_v29 = vpack.c.bf16 %v1068_v27, %v1068_v27 }
 0x498   :  { %1054 = vst.msk [vmem:[#allocation2 + $0x70] sm:$0xf] %vm51_vm1, %v1046_v25 }
 0x499   :  { %v1084_v21 = vsel %vm287_vm10, %v1077_v29, 0 }
 0x49a   :  { %1097 = vmatpush.bf16.msrb.mxu2 %v1084_v21 }
 0x49c   :  { %v2193_v32 = vpop.permute.xlu1 %1167  ;;  %v1067_v48 = vld [vmem:[#allocation2 + $0x58] sm:$0xff] }
 0x49d   :  { %v1172_v34 = vsel %vm70_vm2, %v2193_v32, %v1170_v47  ;;  %v1066_v43 = vld [vmem:[#allocation2 + $0x50] sm:$0xff]  ;;  %v1076_v54 = vpack.c.bf16 %v1067_v48, %v1064_v50  ;;  %v2207_v59 = vpop.permute.xlu0 %1191 }
 0x49e   :  { %1098 = vmatpush.bf16.msrb.mxu2 %v1074_v33  ;;  %v1069_v36 = vld [vmem:[#allocation2 + $0x68] sm:$0xf]  ;;  %1177 = vst [vmem:[#allocation2 + $0x8] sm:$0xf0] %v1172_v34  ;;  %v1075_v52 = vpack.c.bf16 %v1066_v43, %v1063_v49  ;;  %v1353_v43 = vld [vmem:[#allocation2 + $0x10] sm:$0xff] }
 0x49f   :  { %v1070_v37 = vld [vmem:[#allocation2 + $0x70] sm:$0xf]  ;;  %v1078_v38 = vpack.c.bf16 %v1069_v36, %v1069_v36 }
 0x4a0   :  { %v1079_v39 = vpack.c.bf16 %v1070_v37, %v1070_v37 }
 0x4a1   :  { %v1087_v41 = vsel %vm287_vm10, %v1078_v38, 0 }
 0x4a2   :  { %v1090_v46 = vsel %vm287_vm10, %v1079_v39, 0  ;;  %1099 = vmatpush.bf16.msrb.mxu2 %v1071_v40  ;;  %1110 = vmatpush.bf16.msrb.mxu3 %v1087_v41 }
 0x4a3   :  { %1123 = vmatpush.bf16.msra.mxu0 %v1090_v46 }
 0x4a4   :  { %v1243_v55 = vpop.permute.xlu2 %1242 }
 0x4a5   :  { %1655 = vmatmul.msk.bf16.vlgmr.msrb.gmra.mxu2 %vm2362_vm11, %v1055_v53  ;;  %1251 = vst.msk [vmem:[#allocation2 + $0x40] sm:$0xf] %vm51_vm1, %v1243_v55  ;;  %v1352_v50 = vld [vmem:[#allocation2 + $0x8] sm:$0xff] }
 0x4a6   :  { %1111 = vmatpush.bf16.msrb.mxu3 %v1075_v52 }
 0x4a7   :  { %1124 = vmatpush.bf16.msra.mxu0 %v1076_v54  ;;  %v1350_v54 = vld [vmem:[%s2357_s2] sm:$0x3] }
 0x4aa   :  { %1112 = vmatpush.bf16.msrb.mxu3 %v1072_v57 }
 0x4ab   :  { %1125 = vmatpush.bf16.msra.mxu0 %v1073_v58 }
 0x4ac   :  { %v1194_v61 = vpop.permute.xlu1 %1193  ;;  %v2214_v0 = vpop.permute.xlu2 %1289 }
 0x4ad   :  { %v1196_v62 = vsel %vm96_vm3, %v2207_v59, %v1194_v61  ;;  %1202 = vst.msk [vmem:[#allocation2 + $0x28] sm:$0xf] %vm51_vm1, %v1194_v61  ;;  %1656 = vmatmul.msk.bf16.vlgmr.msrb.gmra.mxu3 %vm2363_vm12, %v1055_v53 }
 0x4ae   :  { %1657 = vmatmul.msk.bf16.vlgmr.msra.gmra.mxu0 %vm2364_vm14, %v1055_v53  ;;  %1201 = vst [vmem:[#allocation2 + $0x20] sm:$0xf] %v1196_v62  ;;  %v1266_v1 = vpop.permute.xlu0 %1265 }
 0x4b4   :  { %v1241_v63 = vpop.permute.xlu1 %1240 }
 0x4b5   :  { %v1245_v44 = vsel %vm147_vm6, %v1241_v63, %v1243_v55 }
 0x4b6   :  { %1250 = vst [vmem:[#allocation2 + $0x38] sm:$0xf] %v1245_v44 }
 0x4bc   :  { %v1317_v45 = vpop.permute.xlu2 %1316 }
 0x4bd   :  { %1325 = vst.msk [vmem:[#allocation2 + $0x58] sm:$0xf0] %vm78_vm0, %v1317_v45 }
 0x4c4   :  { %v1268_v2 = vpop.permute.xlu1 %1267  ;;  %v1339_v3 = vpop.permute.xlu2 %1338 }
 0x4c5   :  { %v1270_v4 = vsel %vm173_vm5, %v1266_v1, %v1268_v2  ;;  %1276 = vst.msk [vmem:[#allocation2 + $0x40] sm:$0xf0] %vm78_vm0, %v1268_v2 }
 0x4c6   :  { %1275 = vst [vmem:[#allocation2 + $0x38] sm:$0xf0] %v1270_v4 }
 0x4cc   :  { %v1292_v6 = vpop.permute.xlu0 %1291  ;;  %v1315_v5 = vpop.permute.xlu1 %1314  ;;  %v1359_v34 = vld [vmem:[#allocation2 + $0x40] sm:$0xff] }
 0x4cd   :  { %v1294_v9 = vsel %vm198_vm7, %v2214_v0, %v1292_v6  ;;  %1300 = vst.msk [vmem:[#allocation2 + $0x58] sm:$0xf] %vm51_vm1, %v1292_v6  ;;  %v1319_v10 = vsel %vm224_vm8, %v1315_v5, %v1317_v45  ;;  %v1217_v11 = vpop.permute.xlu2 %1216  ;;  %v1358_v36 = vld [vmem:[#allocation2 + $0x38] sm:$0xff] }
 0x4ce   :  { %1299 = vst [vmem:[#allocation2 + $0x50] sm:$0xf] %v1294_v9 }
 0x4cf   :  { %1324 = vst [vmem:[#allocation2 + $0x50] sm:$0xf0] %v1319_v10 }
 0x4d4   :  { %v1219_v51 = vpop.permute.xlu0 %1218  ;;  %v1362_v30 = vld [vmem:[#allocation2 + $0x58] sm:$0xff] }
 0x4d5   :  { %v1221_v60 = vsel %vm122_vm4, %v1217_v11, %v1219_v51  ;;  %1227 = vst.msk [vmem:[#allocation2 + $0x28] sm:$0xf0] %vm78_vm0, %v1219_v51  ;;  %v1239_v13 = vpop.permute.xlu1 %1238  ;;  %v1264_v14 = vpop.permute.xlu2 %1263  ;;  %v1371_v35 = vpack.c.bf16 %v1362_v30, %v1359_v34  ;;  %vm2365_vm0 = vmmov %vm2362_vm11 }
 0x4d6   :  { %1226 = vst [vmem:[#allocation2 + $0x20] sm:$0xf0] %v1221_v60  ;;  %v1244_v15 = vsel %vm147_vm6, %v1239_v13, %v1241_v63  ;;  %v1269_v23 = vsel %vm173_vm5, %v1264_v14, %v1266_v1  ;;  %v1361_v33 = vld [vmem:[#allocation2 + $0x50] sm:$0xff] }
 0x4d7   :  { %1249 = vst [vmem:[#allocation2 + $0x30] sm:$0xf] %v1244_v15  ;;  %v1370_v37 = vpack.c.bf16 %v1361_v33, %v1358_v36 }
 0x4d8   :  { %1274 = vst [vmem:[#allocation2 + $0x30] sm:$0xf0] %v1269_v23 }
 0x4dc   :  { %v1341_v16 = vpop.permute.xlu0 %1340  ;;  %v1356_v38 = vld [vmem:[#allocation2 + $0x28] sm:$0xff] }
 0x4dd   :  { %v1343_v17 = vsel %vm249_vm9, %v1339_v3, %v1341_v16  ;;  %1349 = vst.msk [vmem:[#allocation2 + $0x70] sm:$0xf] %vm51_vm1, %v1341_v16  ;;  %v1313_v18 = vpop.permute.xlu1 %1312  ;;  %v1166_v47 = vpop.permute.xlu2 %1165  ;;  %v1355_v40 = vld [vmem:[#allocation2 + $0x20] sm:$0xff]  ;;  %v1368_v48 = vpack.c.bf16 %v1356_v38, %v1353_v43 }
 0x4de   :  { %1348 = vst [vmem:[#allocation2 + $0x68] sm:$0xf] %v1343_v17  ;;  %v1318_v8 = vsel %vm224_vm8, %v1313_v18, %v1315_v5  ;;  %v1171_v19 = vsel %vm70_vm2, %v1166_v47, %v2193_v32  ;;  %v1367_v52 = vpack.c.bf16 %v1355_v40, %v1352_v50  ;;  %vm2366_vm2 = vmmov %vm2365_vm0 }
 0x4df   :  { %1323 = vst [vmem:[#allocation2 + $0x48] sm:$0xf0] %v1318_v8  ;;  %v1357_v42 = vld [vmem:[#allocation2 + $0x30] sm:$0xff] }
 0x4e0   :  { %1176 = vst [vmem:[#allocation2] sm:$0xf0] %v1171_v19 }
 0x4e4   :  { %v1337_v12 = vpop.permute.xlu0 %1336  ;;  %v1365_v20 = vld [vmem:[#allocation2 + $0x70] sm:$0xf] }
 0x4e5   :  { %v1215_v22 = vpop.permute.xlu1 %1214  ;;  %v1342_v25 = vsel %vm249_vm9, %v1337_v12, %v1339_v3  ;;  %v1374_v26 = vpack.c.bf16 %v1365_v20, %v1365_v20  ;;  %v1364_v27 = vld [vmem:[#allocation2 + $0x68] sm:$0xf] }
 0x4e6   :  { %v1220_v29 = vsel %vm122_vm4, %v1215_v22, %v1217_v11  ;;  %1347 = vst [vmem:[#allocation2 + $0x60] sm:$0xf] %v1342_v25  ;;  %v1373_v21 = vpack.c.bf16 %v1364_v27, %v1364_v27  ;;  %vm2367_vm4 = vmmov %vm2365_vm0 }
 0x4e7   :  { %1225 = vst [vmem:[#allocation2 + $0x18] sm:$0xf0] %v1220_v29  ;;  %v1385_v24 = vsel %vm287_vm10, %v1374_v26, 0  ;;  %v1351_v61 = vld [vmem:[#allocation2] sm:$0xff] }
 0x4e8   :  { %1418 = vmatpush.bf16.msra.mxu3 %v1385_v24  ;;  %v1382_v32 = vsel %vm287_vm10, %v1373_v21, 0 }
 0x4e9   :  { %1405 = vmatpush.bf16.msra.mxu2 %v1382_v32 }
 0x4ec   :  { %v1288_v39 = vpop.permute.xlu0 %1287  ;;  %1419 = vmatpush.bf16.msra.mxu3 %v1371_v35 }
 0x4ed   :  { %v1293_v41 = vsel %vm198_vm7, %v1288_v39, %v2214_v0  ;;  %1406 = vmatpush.bf16.msra.mxu2 %v1370_v37  ;;  %v1363_v46 = vld [vmem:[#allocation2 + $0x60] sm:$0xf] }
 0x4ee   :  { %1298 = vst [vmem:[#allocation2 + $0x48] sm:$0xf] %v1293_v41  ;;  %v1372_v49 = vpack.c.bf16 %v1363_v46, %v1363_v46 }
 0x4f0   :  { %1420 = vmatpush.bf16.msra.mxu3 %v1368_v48  ;;  %v1379_v53 = vsel %vm287_vm10, %v1372_v49, 0 }
 0x4f1   :  { %1392 = vmatpush.bf16.msra.mxu1 %v1379_v53  ;;  %1407 = vmatpush.bf16.msra.mxu2 %v1367_v52 }
 0x4f3   :  { %1660 = vmatmul.msk.bf16.vlgmr.msra.gmra.mxu3 %vm2365_vm0, %v1350_v54 }
 0x4f4   :  { %v1190_v55 = vpop.permute.xlu0 %1189  ;;  %1659 = vmatmul.msk.bf16.vlgmr.msra.gmra.mxu2 %vm2366_vm2, %v1350_v54 }
 0x4f5   :  { %v1195_v56 = vsel %vm96_vm3, %v1190_v55, %v2207_v59  ;;  %v1360_v57 = vld [vmem:[#allocation2 + $0x48] sm:$0xff]  ;;  %vm2368_vm3 = vcmask 1043456  }
 0x4f6   :  { %1200 = vst [vmem:[#allocation2 + $0x18] sm:$0xf] %v1195_v56  ;;  %v1369_v58 = vpack.c.bf16 %v1360_v57, %v1357_v42  ;;  %vm2369_vm5 = vmmov %vm2368_vm3 }
 0x4f7   :  { %vm2370_vm7 = vmmov %vm2368_vm3 }
 0x4f8   :  { %1393 = vmatpush.bf16.msra.mxu1 %v1369_v58  ;;  %vm2371_vm8 = vmmov %vm2368_vm3 }
 0x4f9   :  { %vm2372_vm9 = vmmov %vm2368_vm3 }
 0x4fa   :  { %vm2373_vm10 = vmmov %vm2368_vm3 }
 0x4fb   :  { %vm2374_vm15 = vmmov %vm2368_vm3 }
 0x4fc   :  { %vm2375_vm13 = vmmov %vm2368_vm3 }
 0x4fd   :  { %v1354_v62 = vld [vmem:[#allocation2 + $0x18] sm:$0xff]  ;;  %vm2376_vm11 = vmmov %vm2368_vm3 }
 0x4fe   :  { %v1366_v63 = vpack.c.bf16 %v1354_v62, %v1351_v61  ;;  %vm2377_vm12 = vmmov %vm2368_vm3 }
 0x4ff   :  { %vm2378_vm14 = vmmov %vm2368_vm3 }
 0x500   :  { %1394 = vmatpush.bf16.msra.mxu1 %v1366_v63  ;;  %vm2379_vm0 = vmmov %vm2368_vm3 }
 0x501   :  { %vm2380_vm2 = vmmov %vm2379_vm0 }
 0x503   :  { %1658 = vmatmul.msk.bf16.vlgmr.msra.gmra.mxu1 %vm2367_vm4, %v1350_v54  ;;  %vm2381_vm4 = vmmov %vm2379_vm0 }
 0x528   :  { %v1101_v0 = vpop.f32.mrf.mxu2 }
 0x52b   :  { %v1127_v44 = vpop.f32.mrf.mxu0 }
 0x52c   :  { %1137 = vst.msk [vmem:[%s2354_s8 + $0x8] sm:$0xf] %vm51_vm1, %v1127_v44 }
 0x530   :  { %v1114_v45 = vpop.f32.mrf.mxu3  ;;  %v1103_v59 = vpop.f32.mrf.mxu2 }
 0x531   :  { %v1133_v1 = vrot.slane %v1114_v45, 4 }
 0x533   :  { %v1434_v2 = vld [vmem:[%s2354_s8 + $0x8] sm:$0xf]  ;;  %v2256_v3 = vsel %vm2368_vm3, %v1101_v0, %v1133_v1  ;;  %v1129_v4 = vpop.f32.mrf.mxu0 }
 0x534   :  { %v1438_v6 = vmul.f32 %v1434_v2, %v1999_v31  ;;  %v1437_v5 = vmul.f32 %v2256_v3, %v1988_v28 }
 0x536   :  { %1447 = vst [vmem:[#allocation1 + $0x10] ss:$2 sm:$0xff] %v1438_v6 }
 0x537   :  { %1445 = vst [vmem:[#allocation1] ss:$2 sm:$0xff] %v1437_v5 }
 0x538   :  { %v1116_v9 = vpop.f32.mrf.mxu3 }
 0x53d   :  { %v1450_v10 = vld.sshfl [vmem:[#allocation1 + $0x10] sm:$0xff pattern:$0x75316420] }
 0x53e   :  { %v1448_v11 = vld.sshfl [vmem:[#allocation1] sm:$0xff pattern:$0x75316420]  ;;  %v1449_v51 = vld.sshfl [vmem:[#allocation1 + $0x8] sm:$0xff pattern:$0x75316420] }
 0x53f   :  { %v1464_v60 = vsel %vm2369_vm5, %v1448_v11, 0.0  ;;  %v1465_v13 = vsel %vm2370_vm7, %v1449_v51, 0.0  ;;  %v1467_v15 = vsel %vm51_vm1, %v1450_v10, 0.0  ;;  %v1558_v10 = vld [vmem:[%s2351_s0 + $0x8] sm:$0xf] }
 0x540   :  { %v1466_v14 = vadd.f32 %v1465_v13, %v1464_v60 }
 0x542   :  { %v1468_v23 = vadd.f32 %v1467_v15, %v1466_v14 }
 0x544   :  { %1469 = vadd.xlane.f32.xlu2 %v1468_v23 }
 0x576   :  { %v1422_v16 = vpop.f32.mrf.mxu3 }
 0x577   :  { %v1409_v17 = vpop.f32.mrf.mxu2  ;;  %1662 = vst.msk [vmem:[%s2354_s8 + $0x14] sm:$0xf] %vm51_vm1, %v1422_v16  ;;  %v1557_v16 = vld [vmem:[%s2351_s0] sm:$0xff] }
 0x578   :  { %v1428_v18 = vrot.slane %v1409_v17, 4 }
 0x57e   :  { %v1436_v47 = vld [vmem:[%s2354_s8 + $0x14] sm:$0xf]  ;;  %v1424_v8 = vpop.f32.mrf.mxu3 }
 0x57f   :  { %v1440_v19 = vmul.f32 %v1436_v47, %v1999_v31  ;;  %v1411_v12 = vpop.f32.mrf.mxu2 }
 0x580   :  { %v1396_v20 = vpop.f32.mrf.mxu1  ;;  %v1541_v12 = vld [vmem:[%s2358_s5] sm:$0xf] }
 0x581   :  { %1454 = vst [vmem:[#allocation1 + $0x30] ss:$2 sm:$0xff] %v1440_v19  ;;  %v2273_v22 = vsel %vm2371_vm8, %v1396_v20, %v1428_v18  ;;  %vm2382_vm8 = vmmov %vm2379_vm0 }
 0x582   :  { %v1439_v25 = vmul.f32 %v2273_v22, %v1988_v28 }
 0x584   :  { %1452 = vst [vmem:[#allocation1 + $0x20] ss:$2 sm:$0xff] %v1439_v25 }
 0x588   :  { %v1398_v26 = vpop.f32.mrf.mxu1  ;;  %v1457_v27 = vld.sshfl [vmem:[#allocation1 + $0x30] sm:$0xff pattern:$0x75316420] }
 0x589   :  { %v1474_v32 = vsel %vm51_vm1, %v1457_v27, 0.0  ;;  %v1554_v27 = vld [vmem:[%s2359_s6] sm:$0xf] }
 0x58b   :  { %v1455_v29 = vld.sshfl [vmem:[#allocation1 + $0x20] sm:$0xff pattern:$0x75316420]  ;;  %v1456_v21 = vld.sshfl [vmem:[#allocation1 + $0x28] sm:$0xff pattern:$0x75316420] }
 0x58c   :  { %v1471_v24 = vsel %vm2372_vm9, %v1455_v29, 0.0  ;;  %v1472_v30 = vsel %vm2373_vm10, %v1456_v21, 0.0  ;;  %vm2383_vm9 = vmmov %vm2379_vm0 }
 0x58d   :  { %v1473_v33 = vadd.f32 %v1472_v30, %v1471_v24  ;;  %v1664_v24 = vld [vmem:[%s2351_s0 + $0x14] sm:$0xf]  ;;  %v1663_v30 = vld [vmem:[%s2351_s0 + $0xc] sm:$0xff] }
 0x58f   :  { %v1475_v34 = vadd.f32 %v1474_v32, %v1473_v33 }
 0x591   :  { %1476 = vadd.xlane.f32.xlu0 %v1475_v34 }
 0x5a5   :  { %1587 = vrot.lane.b32.xlu0 %v1558_v10, %s1690_s22 }
 0x5b7   :  { %v1470_v35 = vpop.xlane.xlu2 %1469 }
 0x5b8   :  { %v1478_v37 = vsel %vm2374_vm15, %v1470_v35, 0.0 }
 0x604   :  { %v1477_v36 = vpop.xlane.xlu0 %1476 }
 0x605   :  { %v1479_v38 = vsel %vm2375_vm13, %v1477_v36, 0.0 }
 0x606   :  { %v1480_v39 = vadd.f32 %v1479_v38, %v1478_v37 }
 0x608   :  { %v2282_v40 = vmul.f32 0.001953125, %v1480_v39  ;;  %v1560_v39 = vld [vmem:[%s2354_s8 + $0x8] sm:$0xf] }
 0x60a   :  { %v1486_v41 = vperm.slane %v2282_v40, %v2026_v7 }
 0x60c   :  { %v1488_v43 = vsub.f32 %v2256_v3, %v1486_v41  ;;  %v1489_v46 = vsub.f32 %v1434_v2, %v1486_v41  ;;  %v1490_v48 = vsub.f32 %v2273_v22, %v1486_v41  ;;  %v1491_v49 = vsub.f32 %v1436_v47, %v1486_v41  ;;  %v1666_v41 = vld [vmem:[%s2354_s8 + $0x14] sm:$0xf] }
 0x60e   :  { %v1492_v50 = vmul.f32 %v1488_v43, %v1988_v28  ;;  %v1493_v52 = vmul.f32 %v1489_v46, %v1999_v31  ;;  %v1494_v53 = vmul.f32 %v1490_v48, %v1988_v28  ;;  %v1495_v54 = vmul.f32 %v1491_v49, %v1999_v31 }
 0x610   :  { %v1496_v55 = vmul.f32 %v1492_v50, %v1492_v50  ;;  %v1497_v56 = vmul.f32 %v1493_v52, %v1493_v52  ;;  %v1499_v42 = vmul.f32 %v1495_v54, %v1495_v54  ;;  %v1498_v57 = vmul.f32 %v1494_v53, %v1494_v53 }
 0x612   :  { %1513 = vst [vmem:[#allocation1 + $0x30] ss:$2 sm:$0xff] %v1499_v42 }
 0x613   :  { %1504 = vst [vmem:[#allocation1] ss:$2 sm:$0xff] %v1496_v55 }
 0x614   :  { %1506 = vst [vmem:[#allocation1 + $0x10] ss:$2 sm:$0xff] %v1497_v56 }
 0x615   :  { %1511 = vst [vmem:[#allocation1 + $0x20] ss:$2 sm:$0xff] %v1498_v57 }
 0x617   :  { %v1588_v32 = vpop.permute.xlu0 %1587 }
 0x618   :  { %v1590_v34 = vrot.slane %v1588_v32, 4 }
 0x619   :  { %v1516_v58 = vld.sshfl [vmem:[#allocation1 + $0x30] sm:$0xff pattern:$0x75316420] }
 0x61a   :  { %v1507_v61 = vld.sshfl [vmem:[#allocation1] sm:$0xff pattern:$0x75316420]  ;;  %v1508_v62 = vld.sshfl [vmem:[#allocation1 + $0x8] sm:$0xff pattern:$0x75316420] }
 0x61b   :  { %v1509_v63 = vld.sshfl [vmem:[#allocation1 + $0x10] sm:$0xff pattern:$0x75316420]  ;;  %v1523_v31 = vsel %vm2378_vm14, %v1507_v61, 0.0  ;;  %v1524_v59 = vsel %vm2379_vm0, %v1508_v62, 0.0  ;;  %v1533_v4 = vsel %vm51_vm1, %v1516_v58, 0.0 }
 0x61c   :  { %v1514_v0 = vld.sshfl [vmem:[#allocation1 + $0x20] sm:$0xff pattern:$0x75316420]  ;;  %v1515_v44 = vld.sshfl [vmem:[#allocation1 + $0x28] sm:$0xff pattern:$0x75316420]  ;;  %v1525_v2 = vadd.f32 %v1524_v59, %v1523_v31 }
 0x61d   :  { %v1530_v45 = vsel %vm2376_vm11, %v1514_v0, 0.0  ;;  %v1531_v28 = vsel %vm2377_vm12, %v1515_v44, 0.0  ;;  %v1526_v6 = vsel %vm51_vm1, %v1509_v63, 0.0 }
 0x61e   :  { %v1532_v1 = vadd.f32 %v1531_v28, %v1530_v45  ;;  %v1527_v9 = vadd.f32 %v1526_v6, %v1525_v2 }
 0x620   :  { %v1534_v5 = vadd.f32 %v1533_v4, %v1532_v1  ;;  %1528 = vadd.xlane.f32.xlu1 %v1527_v9 }
 0x622   :  { %1535 = vadd.xlane.f32.xlu2 %v1534_v5 }
 0x63a   :  { %1585 = vrot.lane.b32.xlu2 %v1557_v16, %s1690_s22 }
 0x693   :  { %v1529_v51 = vpop.xlane.xlu1 %1528 }
 0x694   :  { %v1537_v13 = vsel %vm2381_vm4, %v1529_v51, 0.0 }
 0x695   :  { %v1536_v11 = vpop.xlane.xlu2 %1535 }
 0x696   :  { %v1538_v60 = vsel %vm2380_vm2, %v1536_v11, 0.0 }
 0x697   :  { %v1539_v14 = vadd.f32 %v1538_v60, %v1537_v13 }
 0x699   :  { %v1540_v15 = vmul.f32 0.001953125, %v1539_v14 }
 0x69b   :  { %v1542_v23 = vadd.f32 1e-05, %v1540_v15 }
 0x69d   :  { %1685 = vrsqrt.f32 %v1542_v23  ;;  %vm1549_vm5 = vweird.f32 %v1542_v23  ;;  %v1586_v33 = vpop.permute.xlu2 %1585 }
 0x69e   :  { %v1589_v35 = vrot.slane %v1586_v33, 4 }
 0x6a0   :  { %v1591_v38 = vsel %vm2382_vm8, %v1589_v35, %v1590_v34 }
 0x6a1   :  { %v1592_v54 = vsel %vm147_vm6, %v1586_v33, %v1591_v38 }
 0x6a3   :  { %v1686_v17 = vpop.eup %1685 }
 0x6a4   :  { %v1544_v18 = vmul.f32 %v1686_v17, %v1542_v23  ;;  %vm1550_vm3 = vweird.f32 %v1686_v17 }
 0x6a5   :  { %vm1551_vm7 = vmor %vm1549_vm5, %vm1550_vm3 }
 0x6a6   :  { %v1545_v47 = vmul.f32 %v1686_v17, %v1544_v18 }
 0x6a8   :  { %v1546_v8 = vmul.f32 0.5, %v1545_v47 }
 0x6aa   :  { %v1547_v19 = vsub.f32 1.5, %v1546_v8 }
 0x6ac   :  { %v1548_v20 = vmul.f32 %v1686_v17, %v1547_v19 }
 0x6ae   :  { %v1552_v25 = vsel %vm1551_vm7, %v1686_v17, %v1548_v20 }
 0x6af   :  { %v1553_v26 = vmul.f32 %v1552_v25, %v1541_v12 }
 0x6b1   :  { %1563 = vperm.xlu0 %1681, %v1553_v26   ;;  %v1555_v29 = vmul.f32 %v1553_v26, %v2282_v40 }
 0x6b3   :  { %v1556_v21 = vsub.f32 %v1554_v27, %v1555_v29 }
 0x6b5   :  { %1574 = vperm.xlu1 %1682, %v1556_v21  }
 0x6b9   :  { %1611 = vrot.lane.b32.xlu0 %v1664_v24, %s1690_s22 }
 0x6bd   :  { %1609 = vrot.lane.b32.xlu1 %v1663_v30, %s1690_s22 }
 0x723   :  { %v1564_v36 = vpop.permute.xlu0 %1563 }
 0x724   :  { %v1568_v37 = vperm.slane %v1564_v36, %v2026_v7 }
 0x726   :  { %v1570_v43 = vmul.f32 %v1568_v37, %v2256_v3  ;;  %v1571_v46 = vmul.f32 %v1568_v37, %v1560_v39  ;;  %v1604_v49 = vmul.f32 %v1666_v41, %v1568_v37  ;;  %v1603_v3 = vmul.f32 %v1568_v37, %v2273_v22 }
 0x727   :  { %v1575_v40 = vpop.permute.xlu1 %1574 }
 0x728   :  { %v1579_v48 = vperm.slane %v1575_v40, %v2026_v7 }
 0x72a   :  { %v1581_v50 = vadd.f32 %v1579_v48, %v1570_v43  ;;  %v1582_v52 = vadd.f32 %v1579_v48, %v1571_v46  ;;  %v1606_v53 = vadd.f32 %v1604_v49, %v1579_v48  ;;  %v1605_v62 = vadd.f32 %v1603_v3, %v1579_v48 }
 0x72b   :  { %v1612_v55 = vpop.permute.xlu0 %1611 }
 0x72c   :  { %v1595_v56 = vadd.f32 %v1592_v54, %v1581_v50  ;;  %v1596_v42 = vadd.f32 %v1588_v32, %v1582_v52  ;;  %v1620_v57 = vadd.f32 %v1612_v55, %v1606_v53  ;;  %v1614_v58 = vrot.slane %v1612_v55, 4 }
 0x72e   :  { %1597 = vst [vmem:[%s2354_s8] sm:$0xff] %v1595_v56 }
 0x72f   :  { %1598 = vst.msk [vmem:[%s2354_s8 + $0x8] sm:$0xf] %vm51_vm1, %v1596_v42  ;;  %v1610_v7 = vpop.permute.xlu1 %1609 }
 0x730   :  { %1668 = vst.msk [vmem:[%s2354_s8 + $0x14] sm:$0xf] %vm51_vm1, %v1620_v57  ;;  %v1613_v61 = vrot.slane %v1610_v7, 4 }
 0x732   :  { %v1615_v63 = vsel %vm2383_vm9, %v1613_v61, %v1614_v58 }
 0x733   :  { %v1616_v0 = vsel %vm147_vm6, %v1610_v7, %v1615_v63 }
 0x734   :  { %v1619_v44 = vadd.f32 %v1616_v0, %v1605_v62 }
 0x736   :  { %1667 = vst [vmem:[%s2354_s8 + $0xc] sm:$0xff] %v1619_v44 }

</bundles_post_ra>
